<compile_context>
chip_gen: v6e
topology: v6e:2x2x1
jax: 0.10.0
libtpu: 0.0.40
codegen_flags: <defaults>
</compile_context>

<pallas_src>
import functools

import jax
import jax.numpy as jnp
from jax import lax
from jax.experimental import pallas as pl
from jax.experimental.pallas import tpu as pltpu

_LRELU_SLOPE = 0.3
# Halo rows per side of each sequence tile.  The two stacked 3-tap convs need
# >= 2; the pltpu.roll tap shifts wrap rows 0/1 and r-2/r-1 of the conv
# outputs and that wrap garbage is NOT masked, so HALO >= 2 is what keeps the
# corrupted rows outside the pooled window [HALO, HALO + tile_l).  8 keeps the
# halo pieces and the pooled-window start sublane (8-row) aligned.
_HALO = 8


def _leaky_relu(x, slope=_LRELU_SLOPE):
    return jnp.where(x >= 0, x, slope * x)


def _resblock_kernel(x_ref, halo_ref,
                     bn1s_ref, bn1b_ref, w1_ref, b1_ref,
                     bn2s_ref, bn2b_ref, w2_ref, b2_ref,
                     fw_ref, fb_ref,
                     o_ref,
                     y2_sc, pooled_sc, psum_sc,
                     *, seq_len, lp_valid):
    """One (batch, sequence-tile) grid step of the fused ResBlock.

    x_ref:      (1, tile_l, Cin)     sequence tile, channels-last
    halo_ref:   (1, 1, 2*HALO, Cin)  rows just before / after the tile
    o_ref:      (1, Lp, Cout)        per-batch output block (written last tile)
    y2_sc:      (r, Cout) f32        conv2 rows (source of strided pool reads)
    pooled_sc:  (Lp_pad, Cout) f32   per-batch pooled buffer (stays in VMEM)
    psum_sc:    (1, Cout) f32        running channel sums for the FMS mean
    """
    i = pl.program_id(1)
    n_l = pl.num_programs(1)
    tile_l = x_ref.shape[1]
    tile_lp = tile_l // 3
    cout = o_ref.shape[2]
    r = tile_l + 2 * _HALO
    cdt = w1_ref.dtype                        # MXU operand dtype (bf16 / f32)
    f32 = jnp.float32

    @pl.when(i == 0)
    def _():
        psum_sc[...] = jnp.zeros_like(psum_sc)

    # Extended tile: rows [i*tile_l - HALO, i*tile_l + tile_l + HALO) of x.
    x_ext = jnp.concatenate(
        [halo_ref[0, 0, :_HALO], x_ref[0], halo_ref[0, 0, _HALO:]],
        axis=0).astype(f32)                                        # (r, Cin)

    row = lax.broadcasted_iota(jnp.int32, (r, 1), 0) + (i * tile_l - _HALO)
    in_seq = (row >= 0) & (row < seq_len)     # conv zero padding + L-pad mask

    # bn1 (folded, eval mode) + LeakyReLU; rows outside [0, L) become the
    # zeros that Conv1d(padding=1) expects.
    h = _leaky_relu(x_ext * bn1s_ref[...] + bn1b_ref[...])
    h = jnp.where(in_seq, h, 0.0)

    # Conv1 as im2col-in-K: taps stacked along the contraction dim so the MXU
    # contracts over 3*Cin and emits only (r, Cout).  Row shifts on the XLU.
    h3 = jnp.concatenate(
        [pltpu.roll(h, 1, axis=0), h, pltpu.roll(h, r - 1, axis=0)], axis=1)
    y1 = jnp.dot(h3.astype(cdt), w1_ref[...],
                 preferred_element_type=f32) + b1_ref[...]         # (r, Cout)

    h2 = _leaky_relu(y1 * bn2s_ref[...] + bn2b_ref[...])
    h2 = jnp.where(in_seq, h2, 0.0)                                # conv2 pad

    # Conv2 stays fused-N (K is already Cout): one (r, Cout) x (Cout, 3*Cout)
    # matmul; taps combined with XLU rolls (wrap rows stay outside the pool).
    t = jnp.dot(h2.astype(cdt), w2_ref[...], preferred_element_type=f32)
    t0, t1, t2 = t[:, :cout], t[:, cout:2 * cout], t[:, 2 * cout:]
    y2 = (t1 + pltpu.roll(t0, 1, axis=0) + pltpu.roll(t2, r - 1, axis=0)
          + b2_ref[...])

    # MaxPool1d(3, stride 3): 3 stride-3 sublane reads + 2 maxes over only
    # (tile_lp, Cout) rows (not over all r rows).
    y2_sc[...] = y2
    p0 = y2_sc[pl.ds(_HALO + 0, tile_lp, stride=3), :]
    p1 = y2_sc[pl.ds(_HALO + 1, tile_lp, stride=3), :]
    p2 = y2_sc[pl.ds(_HALO + 2, tile_lp, stride=3), :]
    pooled = jnp.maximum(p0, jnp.maximum(p1, p2))                  # (tile_lp, Cout)

    # Stash the pooled tile in the per-batch VMEM buffer and accumulate the
    # channel sums of the VALID pooled rows (L-pad / floor(L/3) tail excluded).
    off = pl.multiple_of(i * tile_lp, 8)
    pooled_sc[pl.ds(off, tile_lp), :] = pooled
    prow = lax.broadcasted_iota(jnp.int32, (tile_lp, 1), 0) + i * tile_lp
    psum_sc[...] += jnp.sum(jnp.where(prow < lp_valid, pooled, 0.0),
                            axis=0, keepdims=True)

    # FMS gate + residual on the last sequence tile of this batch element:
    # out = pooled * sigmoid(mean @ W.T + b) + pooled.
    @pl.when(i == n_l - 1)
    def _():
        mean = psum_sc[...] * (1.0 / lp_valid)                     # (1, Cout)
        g = jnp.dot(mean, fw_ref[...], preferred_element_type=f32) + fb_ref[...]
        gate = jax.nn.sigmoid(g) + 1.0
        o_ref[0] = (pooled_sc[pl.ds(0, lp_valid), :] * gate).astype(o_ref.dtype)


def _pick_tile_l(seq_len, cout, target=768):
    """Largest multiple of 24 <= target and <= a per-tile VMEM cap.

    tile_l no longer has to divide L (the wrapper pads + masks), so there is
    no whole-sequence fallback that could blow the (r, 3*Cout) conv
    intermediates past VMEM (v7x: 64 MiB total, 32 MiB scoped default).
    """
    # ~44 f32 bytes of conv temporaries per extended row per Cout lane
    # (y1/h2/y2/pool at (r, Cout) plus the (r, 3*Cout) conv2 result).
    cap = max(24, (8 * 1024 * 1024) // (44 * max(cout, 1)) // 24 * 24)
    t = min(target, cap, -(-seq_len // 24) * 24)
    return max(24, t // 24 * 24)


def _vmem_limit_bytes(tile_l, cin, cout, lp_valid, lp_pad, x_bytes, w_bytes):
    r = tile_l + 2 * _HALO
    est = (2 * (tile_l + 2 * _HALO) * cin * x_bytes          # x + halo blocks (x2 buf)
           + 2 * (3 * cin * cout + 3 * cout * cout) * w_bytes
           + 2 * cout * cout * 4                             # fms weight (f32)
           + 2 * lp_valid * cout * x_bytes                   # resident output block
           + (lp_pad + r + 1) * cout * 4                     # VMEM scratches
           + 12 * r * max(3 * cin, 3 * cout) * 4)            # in-flight temporaries
    return int(min(max(2 * est, 32 * 1024 * 1024), 64 * 1024 * 1024))


def resblock_forward_cl(x_blc, params, *, tile_l=None,
                        compute_dtype=jnp.bfloat16):
    """ResBlock forward, channels-last: (B, L, Cin) -> (B, L // 3, Cout).

    Eval-mode BatchNorm (running stats folded).  Keep the surrounding model
    channels-last; Cout is fastest as a multiple of 128 (lane-dense stores).
    On v7x prefer B >= 2 so both TensorCores get a batch element (B is the
    leading "parallel" grid axis; the sequence-tile axis is sequential).
    """
    b, seq_len, cin = x_blc.shape
    cout = params["conv1_w"].shape[0]
    lp_valid = seq_len // 3
    if lp_valid < 1:
        raise ValueError("sequence length must be >= 3 for MaxPool1d(3).")
    eps = 1e-5
    f32 = jnp.float32

    if tile_l is None:
        tile_l = _pick_tile_l(seq_len, cout)
    if tile_l % 24 != 0:
        raise ValueError("tile_l must be a multiple of 24.")
    n_l = -(-seq_len // tile_l)                 # ceil-div; L padded below
    l_pad = n_l * tile_l
    lp_pad = l_pad // 3
    r = tile_l + 2 * _HALO

    # Eval-mode BatchNorm folded into per-channel scale / bias rows (1, C).
    bn1_scale = (params["bn1_gamma"] / jnp.sqrt(params["bn1_var"] + eps)).astype(f32)
    bn1_bias = (params["bn1_beta"] - params["bn1_mean"] * bn1_scale).astype(f32)
    bn2_scale = (params["bn2_gamma"] / jnp.sqrt(params["bn2_var"] + eps)).astype(f32)
    bn2_bias = (params["bn2_beta"] - params["bn2_mean"] * bn2_scale).astype(f32)
    bn1_scale, bn1_bias = bn1_scale.reshape(1, cin), bn1_bias.reshape(1, cin)
    bn2_scale, bn2_bias = bn2_scale.reshape(1, cout), bn2_bias.reshape(1, cout)

    # Conv1 (Cout, Cin, 3) -> im2col-in-K weights (3*Cin, Cout); row j*Cin+ci.
    w1k = jnp.transpose(params["conv1_w"], (2, 1, 0)).reshape(3 * cin, cout)
    w1k = w1k.astype(compute_dtype)
    # Conv2 (Cout, Cout, 3) -> fused-N weights (Cout, 3*Cout); col j*Cout+co.
    w2c = jnp.transpose(params["conv2_w"], (1, 2, 0)).reshape(cout, 3 * cout)
    w2c = w2c.astype(compute_dtype)
    b1 = params["conv1_b"].reshape(1, cout).astype(f32)
    b2 = params["conv2_b"].reshape(1, cout).astype(f32)
    fwt = params["fms_w"].T.astype(f32)          # tiny gate matmul stays f32
    fb = params["fms_b"].reshape(1, cout).astype(f32)

    # Zero-pad L up to n_l * tile_l (padded rows are masked in-kernel).
    x_p = x_blc if l_pad == seq_len else jnp.pad(
        x_blc, ((0, 0), (0, l_pad - seq_len), (0, 0)))

    # One combined halo block per tile: [HALO rows before | HALO rows after].
    if n_l == 1:
        halo = jnp.zeros((b, 1, 2 * _HALO, cin), x_p.dtype)
    else:
        x_t = x_p.reshape(b, n_l, tile_l, cin)
        z = jnp.zeros((b, 1, _HALO, cin), x_p.dtype)
        lo = jnp.concatenate([z, x_t[:, :-1, -_HALO:, :]], axis=1)
        hi = jnp.concatenate([x_t[:, 1:, :_HALO, :], z], axis=1)
        halo = jnp.concatenate([lo, hi], axis=2)

    def bcast(shape):
        nd = len(shape)
        # Grid-invariant operand (constant index map -> no per-step re-DMA).
        # TODO(synk): pipeline_mode=pl.Buffered(1) would single-buffer these
        # when pushing tile_l against v7x's 64 MiB VMEM.
        return pl.BlockSpec(shape, lambda bb, ii, _n=nd: (0,) * _n)

    kern = functools.partial(_resblock_kernel, seq_len=seq_len,
                             lp_valid=lp_valid)
    vmem_limit = _vmem_limit_bytes(
        tile_l, cin, cout, lp_valid, lp_pad,
        jnp.dtype(x_blc.dtype).itemsize, jnp.dtype(compute_dtype).itemsize)

    return pl.pallas_call(
        kern,
        out_shape=jax.ShapeDtypeStruct((b, lp_valid, cout), x_blc.dtype),
        grid=(b, n_l),
        in_specs=[
            pl.BlockSpec((1, tile_l, cin), lambda bb, ii: (bb, ii, 0)),          # x
            pl.BlockSpec((1, 1, 2 * _HALO, cin), lambda bb, ii: (bb, ii, 0, 0)),  # halo
            bcast((1, cin)), bcast((1, cin)),                                    # bn1
            bcast((3 * cin, cout)), bcast((1, cout)),                            # conv1
            bcast((1, cout)), bcast((1, cout)),                                  # bn2
            bcast((cout, 3 * cout)), bcast((1, cout)),                           # conv2
            bcast((cout, cout)), bcast((1, cout)),                               # fms
        ],
        out_specs=pl.BlockSpec((1, lp_valid, cout), lambda bb, ii: (bb, 0, 0)),
        scratch_shapes=[pltpu.VMEM((r, cout), f32),        # conv2 rows (pool src)
                        pltpu.VMEM((lp_pad, cout), f32),   # per-batch pooled buf
                        pltpu.VMEM((1, cout), f32)],       # FMS channel sums
        compiler_params=pltpu.CompilerParams(
            dimension_semantics=("parallel", "arbitrary"),
            vmem_limit_bytes=vmem_limit),
    )(x_p, halo, bn1_scale, bn1_bias, w1k, b1, bn2_scale, bn2_bias, w2c, b2,
      fwt, fb)


def resblock_forward(x_ncl, params, **kw):
    """Drop-in PyTorch-layout wrapper: (B, Cin, L) -> (B, Cout, floor(L/3)).

    Prefer resblock_forward_cl and keep the surrounding model channels-last to
    avoid the two transpose passes (each is a full extra HBM read+write).
    """
    out = resblock_forward_cl(jnp.transpose(x_ncl, (0, 2, 1)), params, **kw)
    return jnp.transpose(out, (0, 2, 1))


def resblock_reference(x_ncl, params):
    """Pure-JAX reference mirroring the PyTorch forward (eval-mode BN)."""
    eps = 1e-5

    def bn(x, g, b, m, v):
        return ((x - m[None, :, None]) / jnp.sqrt(v[None, :, None] + eps)
                * g[None, :, None] + b[None, :, None])

    def lrelu(x):
        return jnp.where(x >= 0, x, _LRELU_SLOPE * x)

    def conv1d(x, w, b):
        y = lax.conv_general_dilated(
            x, w, window_strides=(1,), padding=((1, 1),),
            dimension_numbers=("NCH", "OIH", "NCH"))
        return y + b[None, :, None]

    x = lrelu(bn(x_ncl, params["bn1_gamma"], params["bn1_beta"],
                 params["bn1_mean"], params["bn1_var"]))
    x = conv1d(x, params["conv1_w"], params["conv1_b"])
    x = lrelu(bn(x, params["bn2_gamma"], params["bn2_beta"],
                 params["bn2_mean"], params["bn2_var"]))
    x = conv1d(x, params["conv2_w"], params["conv2_b"])
    B, Cout, L = x.shape
    Lp = L // 3
    x = jnp.max(x[:, :, :Lp * 3].reshape(B, Cout, Lp, 3), axis=-1)
    x_hat = jnp.mean(x, axis=-1)
    x_hat = jax.nn.sigmoid(x_hat @ params["fms_w"].T + params["fms_b"])
    return x * x_hat[:, :, None] + x


def make_params(key, in_channels, out_channels):
    ks = jax.random.split(key, 14)
    f32 = jnp.float32
    return {
        "bn1_gamma": jax.random.uniform(ks[0], (in_channels,), f32, 0.5, 1.5),
        "bn1_beta": 0.1 * jax.random.normal(ks[1], (in_channels,), f32),
        "bn1_mean": 0.1 * jax.random.normal(ks[2], (in_channels,), f32),
        "bn1_var": jax.random.uniform(ks[3], (in_channels,), f32, 0.5, 1.5),
        "conv1_w": 0.2 * jax.random.normal(ks[4], (out_channels, in_channels, 3), f32),
        "conv1_b": 0.1 * jax.random.normal(ks[5], (out_channels,), f32),
        "bn2_gamma": jax.random.uniform(ks[6], (out_channels,), f32, 0.5, 1.5),
        "bn2_beta": 0.1 * jax.random.normal(ks[7], (out_channels,), f32),
        "bn2_mean": 0.1 * jax.random.normal(ks[8], (out_channels,), f32),
        "bn2_var": jax.random.uniform(ks[9], (out_channels,), f32, 0.5, 1.5),
        "conv2_w": 0.2 * jax.random.normal(ks[10], (out_channels, out_channels, 3), f32),
        "conv2_b": 0.1 * jax.random.normal(ks[11], (out_channels,), f32),
        "fms_w": 0.3 * jax.random.normal(ks[12], (out_channels, out_channels), f32),
        "fms_b": 0.1 * jax.random.normal(ks[13], (out_channels,), f32),
    }


if __name__ == "__main__":
    B, Cin, Cout = 2, 16, 128            # Cout lane-dense (multiple of 128)
    key = jax.random.PRNGKey(0)
    kx1, kx2, kp = jax.random.split(key, 3)
    params = make_params(kp, Cin, Cout)

    # (1) f32 operands, L = 96 split into 4 sequence tiles: exercises halos,
    #     the per-tile pooled stash and the merged in-VMEM FMS reduction.
    L1 = 96
    x1 = jax.random.normal(kx1, (B, Cin, L1), jnp.float32)       # PyTorch NCL
    x1_cl = jnp.transpose(x1, (0, 2, 1))
    ref1 = jnp.transpose(resblock_reference(x1, params), (0, 2, 1))
    fwd1 = jax.jit(functools.partial(resblock_forward_cl, tile_l=24,
                                     compute_dtype=jnp.float32))
    out1 = jax.block_until_ready(fwd1(x1_cl, params))
    assert out1.shape == (B, L1 // 3, Cout), out1.shape
    assert jnp.allclose(out1, ref1, rtol=1e-3, atol=1e-3), (
        float(jnp.max(jnp.abs(out1 - ref1))))

    # (2) L = 92: neither a multiple of tile_l (pad + mask path) nor of 3
    #     (floor pooling; tail dropped from the output and the FMS mean).
    L2 = 92
    x2 = jax.random.normal(kx2, (B, Cin, L2), jnp.float32)
    x2_cl = jnp.transpose(x2, (0, 2, 1))
    ref2 = jnp.transpose(resblock_reference(x2, params), (0, 2, 1))
    fwd2 = jax.jit(functools.partial(resblock_forward_cl, tile_l=48,
                                     compute_dtype=jnp.float32))
    out2 = jax.block_until_ready(fwd2(x2_cl, params))
    assert out2.shape == (B, L2 // 3, Cout), out2.shape
    assert jnp.allclose(out2, ref2, rtol=1e-3, atol=1e-3), (
        float(jnp.max(jnp.abs(out2 - ref2))))

    # (3) bf16 MXU operands (v6e/v7x fast path), auto tile pick (single tile).
    fwd3 = jax.jit(functools.partial(resblock_forward_cl,
                                     compute_dtype=jnp.bfloat16))
    out3 = jax.block_until_ready(fwd3(x1_cl, params))
    assert jnp.allclose(out3, ref1, rtol=0.25, atol=0.25), (
        float(jnp.max(jnp.abs(out3 - ref1))))   # bf16 quantization, 2 convs

    # (4) PyTorch-layout (NCL) drop-in wrapper.
    fwd4 = jax.jit(functools.partial(resblock_forward, tile_l=24,
                                     compute_dtype=jnp.float32))
    out4 = jax.block_until_ready(fwd4(x1, params))
    assert jnp.allclose(out4, jnp.transpose(ref1, (0, 2, 1)),
                        rtol=1e-3, atol=1e-3), (
        float(jnp.max(jnp.abs(out4 - jnp.transpose(ref1, (0, 2, 1))))))

    print("KERNEL_OK")
</pallas_src>

<mosaic_0001>
module attributes {stable_mosaic.version = 11 : i64} {
  func.func @_resblock_kernel(%arg0: i32, %arg1: i32, %arg2: memref<1x24x16xf32, #tpu.memory_space<vmem>>, %arg3: memref<1x1x16x16xf32, #tpu.memory_space<vmem>>, %arg4: memref<1x16xf32, #tpu.memory_space<vmem>>, %arg5: memref<1x16xf32, #tpu.memory_space<vmem>>, %arg6: memref<48x128xf32, #tpu.memory_space<vmem>>, %arg7: memref<1x128xf32, #tpu.memory_space<vmem>>, %arg8: memref<1x128xf32, #tpu.memory_space<vmem>>, %arg9: memref<1x128xf32, #tpu.memory_space<vmem>>, %arg10: memref<128x384xf32, #tpu.memory_space<vmem>>, %arg11: memref<1x128xf32, #tpu.memory_space<vmem>>, %arg12: memref<128x128xf32, #tpu.memory_space<vmem>>, %arg13: memref<1x128xf32, #tpu.memory_space<vmem>>, %arg14: memref<1x32x128xf32, #tpu.memory_space<vmem>>, %arg15: memref<40x128xf32, #tpu.memory_space<vmem>>, %arg16: memref<32x128xf32, #tpu.memory_space<vmem>>, %arg17: memref<1x128xf32, #tpu.memory_space<vmem>>) attributes {dimension_semantics = [#tpu.dimension_semantics<parallel>, #tpu.dimension_semantics<arbitrary>], iteration_bounds = array<i64: 2, 4>, scalar_prefetch = 0 : i64, scratch_operands = 3 : i64, tpu.core_type = #tpu.core_type<tc>, window_params = [{transform_indices = @transform_0, window_bounds = array<i64: 1, 24, 16>}, {transform_indices = @transform_1, window_bounds = array<i64: 1, 1, 16, 16>}, {pipeline_mode = #tpu.pipeline_mode<synchronous>, transform_indices = @transform_2, window_bounds = array<i64: 1, 16>}, {pipeline_mode = #tpu.pipeline_mode<synchronous>, transform_indices = @transform_3, window_bounds = array<i64: 1, 16>}, {pipeline_mode = #tpu.pipeline_mode<synchronous>, transform_indices = @transform_4, window_bounds = array<i64: 48, 128>}, {pipeline_mode = #tpu.pipeline_mode<synchronous>, transform_indices = @transform_5, window_bounds = array<i64: 1, 128>}, {pipeline_mode = #tpu.pipeline_mode<synchronous>, transform_indices = @transform_6, window_bounds = array<i64: 1, 128>}, {pipeline_mode = #tpu.pipeline_mode<synchronous>, transform_indices = @transform_7, window_bounds = array<i64: 1, 128>}, {pipeline_mode = #tpu.pipeline_mode<synchronous>, transform_indices = @transform_8, window_bounds = array<i64: 128, 384>}, {pipeline_mode = #tpu.pipeline_mode<synchronous>, transform_indices = @transform_9, window_bounds = array<i64: 1, 128>}, {pipeline_mode = #tpu.pipeline_mode<synchronous>, transform_indices = @transform_10, window_bounds = array<i64: 128, 128>}, {pipeline_mode = #tpu.pipeline_mode<synchronous>, transform_indices = @transform_11, window_bounds = array<i64: 1, 128>}, {transform_indices = @transform_12, window_bounds = array<i64: 1, 32, 128>}]} {
    %c0_i32 = arith.constant 0 : i32
    %0 = arith.cmpi eq, %arg1, %c0_i32 : i32
    %1 = arith.extui %0 : i1 to i32
    %c0_i32_0 = arith.constant 0 : i32
    %2 = arith.cmpi ne, %1, %c0_i32_0 : i32
    scf.if %2 {
      %cst_52 = arith.constant 0.000000e+00 : f32
      %98 = vector.broadcast %cst_52 : f32 to vector<1x128xf32>
      %c0_53 = arith.constant 0 : index
      %c0_54 = arith.constant 0 : index
      %99 = vector.load %arg17[%c0_53, %c0_54] : memref<1x128xf32, #tpu.memory_space<vmem>>, vector<1x128xf32>
      tpu.vector_store %arg17[%c0_53, %c0_54], %98 {strides = array<i32>} : memref<1x128xf32, #tpu.memory_space<vmem>>, vector<1x128xf32>,
    } else {
    }
    %c0 = arith.constant 0 : index
    %c0_1 = arith.constant 0 : index
    %c0_2 = arith.constant 0 : index
    %c0_3 = arith.constant 0 : index
    %3 = vector.load %arg3[%c0, %c0_1, %c0_2, %c0_3] : memref<1x1x16x16xf32, #tpu.memory_space<vmem>>, vector<1x1x8x16xf32>
    %4 = vector.shape_cast %3 : vector<1x1x8x16xf32> to vector<8x16xf32>
    %c0_4 = arith.constant 0 : index
    %c0_5 = arith.constant 0 : index
    %c0_6 = arith.constant 0 : index
    %5 = vector.load %arg2[%c0_4, %c0_5, %c0_6] : memref<1x24x16xf32, #tpu.memory_space<vmem>>, vector<1x24x16xf32>
    %6 = vector.shape_cast %5 : vector<1x24x16xf32> to vector<24x16xf32>
    %c0_7 = arith.constant 0 : index
    %c0_8 = arith.constant 0 : index
    %c8 = arith.constant 8 : index
    %c0_9 = arith.constant 0 : index
    %7 = vector.load %arg3[%c0_7, %c0_8, %c8, %c0_9] : memref<1x1x16x16xf32, #tpu.memory_space<vmem>>, vector<1x1x8x16xf32>
    %8 = vector.shape_cast %7 : vector<1x1x8x16xf32> to vector<8x16xf32>
    %9 = tpu.concatenate %4, %6, %8 in 0 : vector<8x16xf32>, vector<24x16xf32>, vector<8x16xf32> -> vector<40x16xf32>
    %10 = tpu.iota {dimensions = array<i32: 0>} : vector<40x1xi32>
    %c24_i32 = arith.constant 24 : i32
    %11 = arith.muli %arg1, %c24_i32 : i32
    %c8_i32 = arith.constant 8 : i32
    %12 = arith.subi %11, %c8_i32 : i32
    %13 = vector.broadcast %12 : i32 to vector<40x1xi32>
    %14 = arith.addi %10, %13 : vector<40x1xi32>
    %c0_i32_10 = arith.constant 0 : i32
    %15 = vector.broadcast %c0_i32_10 : i32 to vector<40x1xi32>
    %16 = arith.cmpi sge, %14, %15 : vector<40x1xi32>
    %c96_i32 = arith.constant 96 : i32
    %17 = vector.broadcast %c96_i32 : i32 to vector<40x1xi32>
    %18 = arith.cmpi slt, %14, %17 : vector<40x1xi32>
    %19 = arith.andi %16, %18 : vector<40x1xi1>
    %c0_11 = arith.constant 0 : index
    %c0_12 = arith.constant 0 : index
    %20 = vector.load %arg4[%c0_11, %c0_12] : memref<1x16xf32, #tpu.memory_space<vmem>>, vector<1x16xf32>
    %21 = vector.broadcast %20 : vector<1x16xf32> to vector<40x16xf32>
    %22 = arith.mulf %9, %21 : vector<40x16xf32>
    %c0_13 = arith.constant 0 : index
    %c0_14 = arith.constant 0 : index
    %23 = vector.load %arg5[%c0_13, %c0_14] : memref<1x16xf32, #tpu.memory_space<vmem>>, vector<1x16xf32>
    %24 = vector.broadcast %23 : vector<1x16xf32> to vector<40x16xf32>
    %25 = arith.addf %22, %24 : vector<40x16xf32>
    %cst = arith.constant 0.000000e+00 : f32
    %26 = vector.broadcast %cst : f32 to vector<40x16xf32>
    %27 = arith.cmpf oge, %25, %26 : vector<40x16xf32>
    %cst_15 = arith.constant 3.000000e-01 : f32
    %28 = vector.broadcast %cst_15 : f32 to vector<40x16xf32>
    %29 = arith.mulf %28, %25 : vector<40x16xf32>
    %30 = arith.select %27, %25, %29 : vector<40x16xi1>, vector<40x16xf32>
    %cst_16 = arith.constant 0.000000e+00 : f32
    %31 = vector.shape_cast %19 : vector<40x1xi1> to vector<40x1xi1>
    %32 = vector.broadcast %31 : vector<40x1xi1> to vector<40x16xi1>
    %33 = vector.broadcast %cst_16 : f32 to vector<40x16xf32>
    %34 = arith.select %32, %30, %33 : vector<40x16xi1>, vector<40x16xf32>
    %c1_i32 = arith.constant 1 : i32
    %35 = tpu.dynamic_rotate %34 by %c1_i32 dim 0 : vector<40x16xf32>, i32 -> vector<40x16xf32>
    %c39_i32 = arith.constant 39 : i32
    %36 = tpu.dynamic_rotate %34 by %c39_i32 dim 0 : vector<40x16xf32>, i32 -> vector<40x16xf32>
    %37 = tpu.concatenate %35, %34, %36 in 1 : vector<40x16xf32>, vector<40x16xf32>, vector<40x16xf32> -> vector<40x48xf32>
    %c0_17 = arith.constant 0 : index
    %c0_18 = arith.constant 0 : index
    %38 = vector.load %arg6[%c0_17, %c0_18] : memref<48x128xf32, #tpu.memory_space<vmem>>, vector<48x128xf32>
    %cst_19 = arith.constant dense<0.000000e+00> : vector<40x128xf32>
    %39 = tpu.matmul %37, %38, %cst_19 {dimension_numbers = #tpu.dot_dimension_numbers<[1], [0], [0], [1], [0, 0, 1, 1], [], []>} : vector<40x48xf32>, vector<48x128xf32>, vector<40x128xf32> -> vector<40x128xf32>
    %c0_20 = arith.constant 0 : index
    %c0_21 = arith.constant 0 : index
    %40 = vector.load %arg7[%c0_20, %c0_21] : memref<1x128xf32, #tpu.memory_space<vmem>>, vector<1x128xf32>
    %41 = vector.broadcast %40 : vector<1x128xf32> to vector<40x128xf32>
    %42 = arith.addf %39, %41 : vector<40x128xf32>
    %c0_22 = arith.constant 0 : index
    %c0_23 = arith.constant 0 : index
    %43 = vector.load %arg8[%c0_22, %c0_23] : memref<1x128xf32, #tpu.memory_space<vmem>>, vector<1x128xf32>
    %44 = vector.broadcast %43 : vector<1x128xf32> to vector<40x128xf32>
    %45 = arith.mulf %42, %44 : vector<40x128xf32>
    %c0_24 = arith.constant 0 : index
    %c0_25 = arith.constant 0 : index
    %46 = vector.load %arg9[%c0_24, %c0_25] : memref<1x128xf32, #tpu.memory_space<vmem>>, vector<1x128xf32>
    %47 = vector.broadcast %46 : vector<1x128xf32> to vector<40x128xf32>
    %48 = arith.addf %45, %47 : vector<40x128xf32>
    %cst_26 = arith.constant 0.000000e+00 : f32
    %49 = vector.broadcast %cst_26 : f32 to vector<40x128xf32>
    %50 = arith.cmpf oge, %48, %49 : vector<40x128xf32>
    %cst_27 = arith.constant 3.000000e-01 : f32
    %51 = vector.broadcast %cst_27 : f32 to vector<40x128xf32>
    %52 = arith.mulf %51, %48 : vector<40x128xf32>
    %53 = arith.select %50, %48, %52 : vector<40x128xi1>, vector<40x128xf32>
    %cst_28 = arith.constant 0.000000e+00 : f32
    %54 = vector.shape_cast %19 : vector<40x1xi1> to vector<40x1xi1>
    %55 = vector.broadcast %54 : vector<40x1xi1> to vector<40x128xi1>
    %56 = vector.broadcast %cst_28 : f32 to vector<40x128xf32>
    %57 = arith.select %55, %53, %56 : vector<40x128xi1>, vector<40x128xf32>
    %c0_29 = arith.constant 0 : index
    %c0_30 = arith.constant 0 : index
    %58 = vector.load %arg10[%c0_29, %c0_30] : memref<128x384xf32, #tpu.memory_space<vmem>>, vector<128x384xf32>
    %cst_31 = arith.constant dense<0.000000e+00> : vector<40x384xf32>
    %59 = tpu.matmul %57, %58, %cst_31 {dimension_numbers = #tpu.dot_dimension_numbers<[1], [0], [0], [1], [0, 0, 1, 1], [], []>} : vector<40x128xf32>, vector<128x384xf32>, vector<40x384xf32> -> vector<40x384xf32>
    %60 = vector.extract_strided_slice %59 {offsets = [0, 0], sizes = [40, 128], strides = [1, 1]} : vector<40x384xf32> to vector<40x128xf32>
    %61 = vector.extract_strided_slice %59 {offsets = [0, 128], sizes = [40, 128], strides = [1, 1]} : vector<40x384xf32> to vector<40x128xf32>
    %62 = vector.extract_strided_slice %59 {offsets = [0, 256], sizes = [40, 128], strides = [1, 1]} : vector<40x384xf32> to vector<40x128xf32>
    %c1_i32_32 = arith.constant 1 : i32
    %63 = tpu.dynamic_rotate %60 by %c1_i32_32 dim 0 : vector<40x128xf32>, i32 -> vector<40x128xf32>
    %64 = arith.addf %61, %63 : vector<40x128xf32>
    %c39_i32_33 = arith.constant 39 : i32
    %65 = tpu.dynamic_rotate %62 by %c39_i32_33 dim 0 : vector<40x128xf32>, i32 -> vector<40x128xf32>
    %66 = arith.addf %64, %65 : vector<40x128xf32>
    %c0_34 = arith.constant 0 : index
    %c0_35 = arith.constant 0 : index
    %67 = vector.load %arg11[%c0_34, %c0_35] : memref<1x128xf32, #tpu.memory_space<vmem>>, vector<1x128xf32>
    %68 = vector.broadcast %67 : vector<1x128xf32> to vector<40x128xf32>
    %69 = arith.addf %66, %68 : vector<40x128xf32>
    %c0_36 = arith.constant 0 : index
    %c0_37 = arith.constant 0 : index
    %70 = vector.load %arg15[%c0_36, %c0_37] : memref<40x128xf32, #tpu.memory_space<vmem>>, vector<40x128xf32>
    tpu.vector_store %arg15[%c0_36, %c0_37], %69 {strides = array<i32>} : memref<40x128xf32, #tpu.memory_space<vmem>>, vector<40x128xf32>,
    %c8_38 = arith.constant 8 : index
    %c0_39 = arith.constant 0 : index
    %71 = tpu.strided_load %arg15[%c8_38, %c0_39] {strides = array<i32: 3, 1>} : memref<40x128xf32, #tpu.memory_space<vmem>>, vector<8x128xf32>
    %c9 = arith.constant 9 : index
    %c0_40 = arith.constant 0 : index
    %72 = tpu.strided_load %arg15[%c9, %c0_40] {strides = array<i32: 3, 1>} : memref<40x128xf32, #tpu.memory_space<vmem>>, vector<8x128xf32>
    %c10 = arith.constant 10 : index
    %c0_41 = arith.constant 0 : index
    %73 = tpu.strided_load %arg15[%c10, %c0_41] {strides = array<i32: 3, 1>} : memref<40x128xf32, #tpu.memory_space<vmem>>, vector<8x128xf32>
    %74 = arith.maximumf %72, %73 : vector<8x128xf32>
    %75 = arith.maximumf %71, %74 : vector<8x128xf32>
    %c8_i32_42 = arith.constant 8 : i32
    %76 = arith.muli %arg1, %c8_i32_42 : i32
    %77 = tpu.assume_multiple %76, 8 : i32
    %78 = arith.index_cast %77 : i32 to index
    %c0_43 = arith.constant 0 : index
    %79 = vector.load %arg16[%78, %c0_43] : memref<32x128xf32, #tpu.memory_space<vmem>>, vector<8x128xf32>
    tpu.vector_store %arg16[%78, %c0_43], %75 {strides = array<i32>} : memref<32x128xf32, #tpu.memory_space<vmem>>, vector<8x128xf32>,
    %80 = tpu.iota {dimensions = array<i32: 0>} : vector<8x1xi32>
    %c8_i32_44 = arith.constant 8 : i32
    %81 = arith.muli %arg1, %c8_i32_44 : i32
    %82 = vector.broadcast %81 : i32 to vector<8x1xi32>
    %83 = arith.addi %80, %82 : vector<8x1xi32>
    %c0_45 = arith.constant 0 : index
    %c0_46 = arith.constant 0 : index
    %84 = vector.load %arg17[%c0_45, %c0_46] : memref<1x128xf32, #tpu.memory_space<vmem>>, vector<1x128xf32>
    %c32_i32 = arith.constant 32 : i32
    %85 = vector.broadcast %c32_i32 : i32 to vector<8x1xi32>
    %86 = arith.cmpi slt, %83, %85 : vector<8x1xi32>
    %cst_47 = arith.constant 0.000000e+00 : f32
    %87 = vector.shape_cast %86 : vector<8x1xi1> to vector<8x1xi1>
    %88 = vector.broadcast %87 : vector<8x1xi1> to vector<8x128xi1>
    %89 = vector.broadcast %cst_47 : f32 to vector<8x128xf32>
    %90 = arith.select %88, %75, %89 : vector<8x128xi1>, vector<8x128xf32>
    %cst_48 = arith.constant dense<0.000000e+00> : vector<128xf32>
    %91 = vector.multi_reduction <add>, %90, %cst_48 [0] : vector<8x128xf32> to vector<128xf32>
    %92 = vector.shape_cast %91 : vector<128xf32> to vector<1x128xf32>
    %93 = arith.addf %84, %92 : vector<1x128xf32>
    %c0_49 = arith.constant 0 : index
    %c0_50 = arith.constant 0 : index
    %94 = vector.load %arg17[%c0_49, %c0_50] : memref<1x128xf32, #tpu.memory_space<vmem>>, vector<1x128xf32>
    tpu.vector_store %arg17[%c0_49, %c0_50], %93 {strides = array<i32>} : memref<1x128xf32, #tpu.memory_space<vmem>>, vector<1x128xf32>,
    %c3_i32 = arith.constant 3 : i32
    %95 = arith.cmpi eq, %arg1, %c3_i32 : i32
    %96 = arith.extui %95 : i1 to i32
    %c0_i32_51 = arith.constant 0 : i32
    %97 = arith.cmpi ne, %96, %c0_i32_51 : i32
    scf.if %97 {
      %c0_52 = arith.constant 0 : index
      %c0_53 = arith.constant 0 : index
      %98 = vector.load %arg17[%c0_52, %c0_53] : memref<1x128xf32, #tpu.memory_space<vmem>>, vector<1x128xf32>
      %cst_54 = arith.constant 3.125000e-02 : f32
      %99 = vector.broadcast %cst_54 : f32 to vector<1x128xf32>
      %100 = arith.mulf %98, %99 : vector<1x128xf32>
      %c0_55 = arith.constant 0 : index
      %c0_56 = arith.constant 0 : index
      %101 = vector.load %arg12[%c0_55, %c0_56] : memref<128x128xf32, #tpu.memory_space<vmem>>, vector<128x128xf32>
      %cst_57 = arith.constant dense<0.000000e+00> : vector<1x128xf32>
      %102 = tpu.matmul %100, %101, %cst_57 {dimension_numbers = #tpu.dot_dimension_numbers<[1], [0], [0], [1], [0, 0, 1, 1], [], []>} : vector<1x128xf32>, vector<128x128xf32>, vector<1x128xf32> -> vector<1x128xf32>
      %c0_58 = arith.constant 0 : index
      %c0_59 = arith.constant 0 : index
      %103 = vector.load %arg13[%c0_58, %c0_59] : memref<1x128xf32, #tpu.memory_space<vmem>>, vector<1x128xf32>
      %104 = arith.addf %102, %103 : vector<1x128xf32>
      %105 = arith.negf %104 : vector<1x128xf32>
      %106 = math.exp %105 : vector<1x128xf32>
      %cst_60 = arith.constant 1.000000e+00 : f32
      %107 = vector.broadcast %cst_60 : f32 to vector<1x128xf32>
      %108 = arith.addf %107, %106 : vector<1x128xf32>
      %109 = arith.divf %107, %108 : vector<1x128xf32>
      %cst_61 = arith.constant 1.000000e+00 : f32
      %110 = vector.broadcast %cst_61 : f32 to vector<1x128xf32>
      %111 = arith.addf %109, %110 : vector<1x128xf32>
      %c0_62 = arith.constant 0 : index
      %c0_63 = arith.constant 0 : index
      %112 = vector.load %arg16[%c0_62, %c0_63] : memref<32x128xf32, #tpu.memory_space<vmem>>, vector<32x128xf32>
      %113 = vector.broadcast %111 : vector<1x128xf32> to vector<32x128xf32>
      %114 = arith.mulf %112, %113 : vector<32x128xf32>
      %c0_64 = arith.constant 0 : index
      %c0_65 = arith.constant 0 : index
      %c0_66 = arith.constant 0 : index
      %115 = vector.load %arg14[%c0_64, %c0_65, %c0_66] : memref<1x32x128xf32, #tpu.memory_space<vmem>>, vector<1x32x128xf32>
      %116 = vector.shape_cast %115 : vector<1x32x128xf32> to vector<32x128xf32>
      %117 = vector.shape_cast %114 : vector<32x128xf32> to vector<1x32x128xf32>
      tpu.vector_store %arg14[%c0_64, %c0_65, %c0_66], %117 {strides = array<i32>} : memref<1x32x128xf32, #tpu.memory_space<vmem>>, vector<1x32x128xf32>,
    } else {
    }
    return
  }
  func.func @transform_0(%arg0: i32, %arg1: i32) -> (i32, i32, i32) {
    %c0_i32 = arith.constant 0 : i32
    %c0_i32_0 = arith.constant 0 : i32
    return %arg0, %arg1, %c0_i32 : i32, i32, i32
  }
  func.func @transform_1(%arg0: i32, %arg1: i32) -> (i32, i32, i32, i32) {
    %c0_i32 = arith.constant 0 : i32
    %c0_i32_0 = arith.constant 0 : i32
    %c0_i32_1 = arith.constant 0 : i32
    return %arg0, %arg1, %c0_i32, %c0_i32_0 : i32, i32, i32, i32
  }
  func.func @transform_2(%arg0: i32, %arg1: i32) -> (i32, i32) {
    %c0_i32 = arith.constant 0 : i32
    %c0_i32_0 = arith.constant 0 : i32
    %c0_i32_1 = arith.constant 0 : i32
    return %c0_i32, %c0_i32_0 : i32, i32
  }
  func.func @transform_3(%arg0: i32, %arg1: i32) -> (i32, i32) {
    %c0_i32 = arith.constant 0 : i32
    %c0_i32_0 = arith.constant 0 : i32
    %c0_i32_1 = arith.constant 0 : i32
    return %c0_i32, %c0_i32_0 : i32, i32
  }
  func.func @transform_4(%arg0: i32, %arg1: i32) -> (i32, i32) {
    %c0_i32 = arith.constant 0 : i32
    %c0_i32_0 = arith.constant 0 : i32
    %c0_i32_1 = arith.constant 0 : i32
    return %c0_i32, %c0_i32_0 : i32, i32
  }
  func.func @transform_5(%arg0: i32, %arg1: i32) -> (i32, i32) {
    %c0_i32 = arith.constant 0 : i32
    %c0_i32_0 = arith.constant 0 : i32
    %c0_i32_1 = arith.constant 0 : i32
    return %c0_i32, %c0_i32_0 : i32, i32
  }
  func.func @transform_6(%arg0: i32, %arg1: i32) -> (i32, i32) {
    %c0_i32 = arith.constant 0 : i32
    %c0_i32_0 = arith.constant 0 : i32
    %c0_i32_1 = arith.constant 0 : i32
    return %c0_i32, %c0_i32_0 : i32, i32
  }
  func.func @transform_7(%arg0: i32, %arg1: i32) -> (i32, i32) {
    %c0_i32 = arith.constant 0 : i32
    %c0_i32_0 = arith.constant 0 : i32
    %c0_i32_1 = arith.constant 0 : i32
    return %c0_i32, %c0_i32_0 : i32, i32
  }
  func.func @transform_8(%arg0: i32, %arg1: i32) -> (i32, i32) {
    %c0_i32 = arith.constant 0 : i32
    %c0_i32_0 = arith.constant 0 : i32
    %c0_i32_1 = arith.constant 0 : i32
    return %c0_i32, %c0_i32_0 : i32, i32
  }
  func.func @transform_9(%arg0: i32, %arg1: i32) -> (i32, i32) {
    %c0_i32 = arith.constant 0 : i32
    %c0_i32_0 = arith.constant 0 : i32
    %c0_i32_1 = arith.constant 0 : i32
    return %c0_i32, %c0_i32_0 : i32, i32
  }
  func.func @transform_10(%arg0: i32, %arg1: i32) -> (i32, i32) {
    %c0_i32 = arith.constant 0 : i32
    %c0_i32_0 = arith.constant 0 : i32
    %c0_i32_1 = arith.constant 0 : i32
    return %c0_i32, %c0_i32_0 : i32, i32
  }
  func.func @transform_11(%arg0: i32, %arg1: i32) -> (i32, i32) {
    %c0_i32 = arith.constant 0 : i32
    %c0_i32_0 = arith.constant 0 : i32
    %c0_i32_1 = arith.constant 0 : i32
    return %c0_i32, %c0_i32_0 : i32, i32
  }
  func.func @transform_12(%arg0: i32, %arg1: i32) -> (i32, i32, i32) {
    %c0_i32 = arith.constant 0 : i32
    %c0_i32_0 = arith.constant 0 : i32
    %c0_i32_1 = arith.constant 0 : i32
    return %arg0, %c0_i32, %c0_i32_0 : i32, i32, i32
  }
}

</mosaic_0001>

<bundles_post_ra>
// kernel: resblock_forward_cl.1
= control target key start
LH: loop header
LB: loop body
LE: loop exit
PB: predicated region body
PF: predicated region fallthrough
CT: control target
= control target key end

     0   :  { %s2388_s0 = inlined_call_operand.vmem [shape: f32[2,96,16], index: 0, kind: input, shape index: {}]   ;;  %s2389_s1 = inlined_call_operand.vmem [shape: f32[2,4,16,16], index: 1, kind: input, shape index: {}]   ;;  %s2390_s2 = inlined_call_operand.vmem [shape: f32[1,16], index: 2, kind: input, shape index: {}]   ;;  %s2391_s3 = inlined_call_operand.vmem [shape: f32[1,16], index: 3, kind: input, shape index: {}]   ;;  %s2392_s4 = inlined_call_operand.vmem [shape: f32[48,128], index: 4, kind: input, shape index: {}]   ;;  %s2393_s5 = inlined_call_operand.vmem [shape: f32[1,128], index: 5, kind: input, shape index: {}]   ;;  %s2394_s6 = inlined_call_operand.vmem [shape: f32[1,128], index: 6, kind: input, shape index: {}]   ;;  %s2395_s7 = inlined_call_operand.vmem [shape: f32[1,128], index: 7, kind: input, shape index: {}]   ;;  %s2396_s8 = inlined_call_operand.vmem [shape: f32[128,384], index: 8, kind: input, shape index: {}]   ;;  %s2397_s9 = inlined_call_operand.vmem [shape: f32[1,128], index: 9, kind: input, shape index: {}]   ;;  %s2398_s10 = inlined_call_operand.vmem [shape: f32[128,128], index: 10, kind: input, shape index: {}]   ;;  %s2399_s11 = inlined_call_operand.vmem [shape: f32[1,128], index: 11, kind: input, shape index: {}]   ;;  %s2400_s12 = inlined_call_operand.hbm [shape: f32[2,32,128], index: 12, kind: output, shape index: {}]  }
   0x1   :  { %2414 = sst [smem:[#allocation19_spill]] %s2399_s11 }
   0x2   :  { %2415 = sst [smem:[#allocation20_spill]] %s2400_s12 }
   0x3   :  { %17 = vsyncpa [#allocation6], 0 }
   0x4   :  { %19 = vsyncpa [#allocation6 + $0x1], 0  ;;  %s1796_s21 = smov 0   ;;  %s1798_s22 = smov 0  }
   0x5   :  { %s1800_s23 = smov 0   ;;  %s1802_s24 = smov 0  }
   0x6   :  { %s1804_s25 = smov 0   ;;  %s1806_s26 = smov 0  }
   0x7   :  { %s1808_s27 = smov 0   ;;  %s1810_s28 = smov 0  }
   0x8 LB: > { %2416 = sst [smem:[#allocation8_spill]] %s1691_s21  ;;  %s1342_s29 = sadd.s32 4294967295, %s1719_s28   ;;  %s1719_s28 = sphi %s1810_s28, %s25_s28   ;;  %s1715_s27 = sphi %s1808_s27, %s2453_s27   ;;  %s1711_s26 = sphi %s1806_s26, %s2452_s26   ;;  %s1707_s25 = sphi %s1804_s25, %s2451_s25   ;;  %s1703_s24 = sphi %s1802_s24, %s2450_s24   ;;  %s1699_s23 = sphi %s1800_s23, %s2449_s23   ;;  %s1695_s22 = sphi %s1798_s22, %s2448_s22   ;;  %s1691_s21 = sphi %s1796_s21, %s2447_s21  }
   0x9   : > { %2417 = sst [smem:[#allocation9_spill]] %s1695_s22  ;;  %s1343_s30 = sadd.s32 4294967294, %s1719_s28  }
   0xa   : > { %2418 = sst [smem:[#allocation10_spill]] %s1699_s23  ;;  %s34_s13 = sadd.s32 1, %s1711_s26 }
   0xb   : > { %2419 = sst [smem:[#allocation11_spill]] %s1711_s26  ;;  %p35_p0 = scmp.ge.s32.totalorder %s34_s13, 4 }
   0xc   : > { %2420 = sst [smem:[#allocation12_spill]] %s1715_s27  ;;  %s37_s14 = sadd.s32 1, %s1715_s27 }
   0xd   : > { %2421 = sst [smem:[#allocation13_spill]] %s1719_s28  ;;  %p320_p1 = scmp.ne.s32.totalorder %s1699_s23, %s1695_s22 }
   0xe   : > { %p321_p2 = scmp.eq.s32.totalorder %s1342_s29, 7  ;;  %s2455_s13 = smov (%p35_p0, %s34_s13), 0 }
   0xf   : > { %2422 = sst [smem:[#allocation14_spill]] %s2455_s13  ;;  %s2457_s14 = smov (!%p35_p0, %s37_s14), %s1715_s27 }
  0x10   : > { %p1845_p3 = por %p321_p2, %p320_p1  ;;  %p326_p4 = scmp.ne.s32.totalorder %s1695_s22, %s1691_s21 }
  0x11   : > { %p39_p5 = scmp.ge.s32.totalorder %s2457_s14, 2  ;;  %p327_p6 = scmp.eq.s32.totalorder %s1343_s30, 7 }
  0x12   : > { %s2423_s15 = scalar_select %p1845_p3, 1, 0 }
  0x13   : > { %p1346_p7 = scmp.ge.s32.totalorder %s1719_s28, 1  ;;  %p400_p8 = scmp.lt.s32.totalorder %s1719_s28, 9 }
  0x14   : > { %2424 = sst [smem:[#allocation15_spill]] %s2423_s15  ;;  %s2459_s14 = smov (%p39_p5, %s2457_s14), 0 }
  0x15   : > { %2425 = sst [smem:[#allocation16_spill]] %s2459_s14  ;;  %p1855_p9 = por %p327_p6, %p326_p4 }
  0x16   : > { %p401_p10 = pnand %p1346_p7, %p400_p8  ;;  %s307_s17 = ssub.s32 %s1715_s27, %s2459_s14 }
  0x17   : > { %s2426_s16 = scalar_select %p1855_p9, 1, 0 }
  0x18   : > { %s310_s18 = sadd.s32 1, %s1699_s23  ;;  %p308_p11 = scmp.eq.s32.totalorder %s307_s17, 0 }
  0x19   : > { %2427 = sst [smem:[#allocation17_spill]] %s2426_s16  ;;  %404 = sbr.rel (%p401_p10) target bundleno = 912 (0x390), region = 68 }
  0x1a   : > { %s1863_s19 = scalar_select %p308_p11, %s1699_s23, %s310_s18  }
  0x1b   : > { %s2413_s20 = sand.u32 (!%p401_p10), 1, %s1695_s22   ;;  %s455_s29 = smul.u32 (!%p401_p10), 3, %s1703_s24 }
  0x1c   : > { %2428 = sst [smem:[#allocation18_spill]] %s1863_s19  ;;  %s1347_s30 = sshll.u32 (!%p401_p10), %s2413_s20, 5 }
  0x1d   : > { %p456_p12 = scmp.lt.s32.totalorder (!%p401_p10), %s1707_s25, 1  ;;  %p458_p13 = scmp.lt.s32.totalorder (!%p401_p10), %s455_s29, 11 }
  0x1e   : > { %p467_p0 = scmp.lt.s32.totalorder %s1703_s24, 3  ;;  %s1879_s11 = scalar_lea.vmem [#allocation5], %s1347_s30 }
  0x1f   : > { %s457_s13 = scalar_select %p456_p12, %s1707_s25, 1 }
  0x20   : > { %s2461_s29 = smov (!%p458_p13, %s455_s29), 11  ;;  %p1352_p1 = scmp.ne.s32.totalorder %s1703_s24, 0 }
  0x21   : > { %s1542_s14 = smul.u32 12, %s457_s13  ;;  %s1350_s23 = sshll.u32 %s457_s13, 3 }
  0x22   : > { %s468_s16 = scalar_select %p467_p0, %s1703_s24, 3 }
  0x23   : > { %s461_s17 = sadd.s32 %s1542_s14, %s2461_s29  ;;  %477 = sbr.rel (%p1352_p1) target bundleno = 42 (0x2a), region = 72 }
  0x24   : > { %s1348_s18 = sshll.u32 %s461_s17, 3  ;;  %s1349_s21 = sshll.u32 %s468_s16, 1 }
  0x25   : > { %s463_s19 = scalar_lea.vmem %s2388_s0, %s1348_s18  ;;  %s471_s28 = sadd.s32 %s1350_s23, %s1349_s21 }
  0x26   : > { %s1351_s12 = sshll.u32 %s471_s28, 3 }
  0x27   : > { %s473_s20 = scalar_lea.vmem %s2389_s1, %s1351_s12 }
  0x28   : > { %v1721_v0 = vmov 0.0  }
  0x29   : > { %478 = vst [vmem:[#allocation4] sm:$0x1] %v1721_v0 }
  0x2a PF: > { %v479_v1 = vld [vmem:[%s473_s20] sm:$0xff]  ;;  %v484_v2 = vlaneseq  ;;  %s490_s26 = smul.u32 24, %s1703_s24  ;;  %v481_v7 = vld [vmem:[%s463_s19 + $0x8] sm:$0xff]  ;;  %v482_v8 = vld [vmem:[%s463_s19 + $0x10] sm:$0xff]  ;;  %v1722_v13 = vmov 0.0   ;;  %s1723_s18 = smov 16  }
  0x2b   : > { %v1354_v3 = vld [vmem:[%s2390_s2] ss:$0 sm:$0xff]  ;;  %v483_v12 = vld [vmem:[%s473_s20 + $0x8] sm:$0xff]  ;;  %1433 = vmatprep.subr.mxu0 %v1722_v13  ;;  %916 = vmatprep.mubr.f32.mxu1 %v1722_v13  ;;  %v644_v23 = vld [vmem:[%s2392_s4 + $0x18] sm:$0xff]  ;;  %s1724_s13 = smov 32   ;;  %s1375_s28 = sshll.u32 %s1703_s24, 3 }
  0x2c   : > { %v1889_v4 = vld [vmem:[%s2391_s3] ss:$0 sm:$0xff]  ;;  %v520_v5 = vmul.f32 %v1354_v3, %v479_v1  ;;  %v1891_v9 = vshrl.u32 %v484_v2, 7  ;;  %s1353_s12 = sadd.s32 4294967288, %s490_s26  ;;  %v522_v11 = vmul.f32 %v1354_v3, %v481_v7  ;;  %v646_v14 = vld [vmem:[%s2392_s4 + $0x28] sm:$0xff]  ;;  %v523_v18 = vmul.f32 %v1354_v3, %v482_v8  ;;  %v643_v28 = vld [vmem:[%s2392_s4 + $0x10] sm:$0xff] }
  0x2d   : > { %v480_v6 = vld [vmem:[%s463_s19] sm:$0xff]  ;;  %v1901_v16 = vstv %s1353_s12  ;;  %v524_v19 = vmul.f32 %v1354_v3, %v483_v12  ;;  %1434 = vmatpush3.msra.mxu0 %v646_v14  ;;  %v642_v35 = vld [vmem:[%s2392_s4 + $0x8] sm:$0xff]  ;;  %s1093_s14 = scalar_lea.vmem [#allocation3], %s1375_s28  ;;  %p1376_p2 = scmp.ne.s32.totalorder %s1703_s24, 3 }
  0x2e   : > { %v521_v10 = vmul.f32 %v1354_v3, %v480_v6  ;;  %v645_v15 = vld [vmem:[%s2392_s4 + $0x20] sm:$0xff]  ;;  %v532_v17 = vadd.f32 %v1889_v4, %v520_v5  ;;  %v493_v20 = vadd.s32 %v1901_v16, %v1891_v9  ;;  %v486_v21 = vadd.s32 8, %v1891_v9  ;;  %1435 = vmatprep.subr.mxu0 %v1722_v13  ;;  %v849_v5 = vld [vmem:[%s2396_s8 + $0x168] sm:$0xff] }
  0x2f   : > { %vm583_vm0 = vcmp.lt.s32.totalorder %v1891_v9, 7  ;;  %v487_v25 = vadd.s32 16, %v1891_v9  ;;  %v534_v26 = vadd.f32 %v1889_v4, %v522_v11  ;;  %1436 = vmatpush3.msra.mxu0 %v645_v15  ;;  %v488_v42 = vadd.s32 24, %v1891_v9  ;;  %v641_v43 = vld [vmem:[%s2392_s4] sm:$0xff]  ;;  %v846_v11 = vld [vmem:[%s2396_s8 + $0x150] sm:$0xff] }
  0x30   : > { %v533_v22 = vadd.f32 %v1889_v4, %v521_v10  ;;  %vm537_vm1 = vcmp.ge.f32.partialorder %v532_v17, 0.0  ;;  %v542_v24 = vmul.f32 0.3, %v532_v17  ;;  %vm498_vm2 = vcmp.ge.s32.totalorder %v493_v20, 0  ;;  %1437 = vmatprep.subr.mxu0 %v1722_v13  ;;  %v847_v10 = vld [vmem:[%s2396_s8 + $0x158] sm:$0xff]  ;;  %v844_v15 = vld [vmem:[%s2396_s8 + $0x140] sm:$0xff] }
  0x31   : > { %vm503_vm3 = vcmp.lt.s32.totalorder %v493_v20, 96  ;;  %v494_v27 = vadd.s32 %v1901_v16, %v486_v21  ;;  %v495_v32 = vadd.s32 %v1901_v16, %v487_v25  ;;  %vm539_vm6 = vcmp.ge.f32.partialorder %v534_v26, 0.0  ;;  %1438 = vmatpush3.msra.mxu0 %v644_v23  ;;  %v841_v20 = vld [vmem:[%s2396_s8 + $0x128] sm:$0xff]  ;;  %v840_v21 = vld [vmem:[%s2396_s8 + $0x120] sm:$0xff]  ;;  %v835_v25 = vld [vmem:[%s2396_s8 + $0xf8] sm:$0xff] }
  0x32   : > { %vm538_vm4 = vcmp.ge.f32.partialorder %v533_v22, 0.0  ;;  %vm1920_vm5 = vmand %vm498_vm2, %vm503_vm3  ;;  %v547_v30 = vsel %vm537_vm1, %v532_v17, %v542_v24  ;;  %v543_v31 = vmul.f32 0.3, %v533_v22  ;;  %v544_v34 = vmul.f32 0.3, %v534_v26  ;;  %1439 = vmatprep.subr.mxu0 %v1722_v13  ;;  %v837_v24 = vld [vmem:[%s2396_s8 + $0x108] sm:$0xff] }
  0x33   : > { %v1927_v33 = vsel %vm1920_vm5, %v547_v30, 0.0  ;;  %vm499_vm7 = vcmp.ge.s32.totalorder %v494_v27, 0  ;;  %vm504_vm8 = vcmp.lt.s32.totalorder %v494_v27, 96  ;;  %vm500_vm10 = vcmp.ge.s32.totalorder %v495_v32, 0  ;;  %1440 = vmatpush3.msra.mxu0 %v643_v28  ;;  %v832_v27 = vld [vmem:[%s2396_s8 + $0xe0] sm:$0xff]  ;;  %v831_v28 = vld [vmem:[%s2396_s8 + $0xd8] sm:$0xff] }
  0x34   : > { %594 = vrot.lane.b32.xlu0 %v1927_v33, %s1723_s18  ;;  %v567_v36 = vrot.slane %v1927_v33, 7  ;;  %v578_v37 = vrot.slane %v1927_v33, 1  ;;  %vm1937_vm9 = vmand %vm499_vm7, %vm504_vm8  ;;  %v548_v39 = vsel %vm538_vm4, %v533_v22, %v543_v31  ;;  %vm505_vm11 = vcmp.lt.s32.totalorder %v495_v32, 96  ;;  %1441 = vmatprep.subr.mxu0 %v1722_v13  ;;  %v838_v22 = vld [vmem:[%s2396_s8 + $0x110] sm:$0xff]  ;;  %v829_v30 = vld [vmem:[%s2396_s8 + $0xc8] sm:$0xff] }
  0x35   : > { %v563_v40 = vsel %vm1937_vm9, %v548_v39, 0.0  ;;  %v549_v41 = vsel %vm539_vm6, %v534_v26, %v544_v34  ;;  %vm1951_vm12 = vmand %vm500_vm10, %vm505_vm11  ;;  %v535_v47 = vadd.f32 %v1889_v4, %v523_v18  ;;  %v489_v48 = vadd.s32 32, %v1891_v9  ;;  %1442 = vmatpush3.msra.mxu0 %v642_v35  ;;  %v834_v26 = vld [vmem:[%s2396_s8 + $0xf0] sm:$0xff]  ;;  %v828_v31 = vld [vmem:[%s2396_s8 + $0xc0] sm:$0xff] }
  0x36   : > { %596 = vrot.lane.b32.xlu1 %v563_v40, %s1723_s18  ;;  %v568_v44 = vrot.slane %v563_v40, 7  ;;  %v579_v45 = vrot.slane %v563_v40, 1  ;;  %v564_v49 = vsel %vm1951_vm12, %v549_v41, 0.0  ;;  %v496_v50 = vadd.s32 %v1901_v16, %v488_v42  ;;  %1443 = vmatprep.subr.mxu0 %v1722_v13  ;;  %v826_v32 = vld [vmem:[%s2396_s8 + $0xb0] sm:$0xff]  ;;  %v825_v33 = vld [vmem:[%s2396_s8 + $0xa8] sm:$0xff]  ;;  %v823_v34 = vld [vmem:[%s2396_s8 + $0x98] sm:$0xff] }
  0x37   : > { %v536_v51 = vadd.f32 %v1889_v4, %v524_v19  ;;  %vm572_vm13 = vcmp.lt.s32.totalorder %v1891_v9, 1  ;;  %v580_v53 = vrot.slane %v564_v49, 1  ;;  %vm540_vm14 = vcmp.ge.f32.partialorder %v535_v47, 0.0  ;;  %1444 = vmatpush3.msra.mxu0 %v641_v43  ;;  %v850_v4 = vld [vmem:[%s2396_s8 + $0x170] sm:$0xff]  ;;  %v843_v19 = vld [vmem:[%s2396_s8 + $0x138] sm:$0xff] }
  0x38   : > { %v587_v52 = vsel %vm583_vm0, %v578_v37, %v579_v45  ;;  %v545_v54 = vmul.f32 0.3, %v535_v47  ;;  %vm501_vm15 = vcmp.ge.s32.totalorder %v496_v50, 0  ;;  %vm506_vm1 = vcmp.lt.s32.totalorder %v496_v50, 96  ;;  %1460 = vmatprep.subr.mxu0 %v1722_v13  ;;  %852 = vmatprep.subr.mxu1 %v850_v4  ;;  %v822_v35 = vld [vmem:[%s2396_s8 + $0x90] sm:$0xff]  ;;  %v851_v43 = vld [vmem:[%s2396_s8 + $0x178] sm:$0xff] }
  0x39   : > { %614 = vrot.lane.b32.xlu0 %v587_v52, %s1724_s13  ;;  %v497_v55 = vadd.s32 %v1901_v16, %v489_v48  ;;  %vm541_vm2 = vcmp.ge.f32.partialorder %v536_v51, 0.0  ;;  %v586_v56 = vsel %vm583_vm0, %v579_v45, %v580_v53  ;;  %vm1972_vm3 = vmand %vm501_vm15, %vm506_vm1  ;;  %v546_v59 = vmul.f32 0.3, %v536_v51  ;;  %853 = vmatpush1.msra.mxu1 %v849_v5  ;;  %v848_v48 = vld [vmem:[%s2396_s8 + $0x160] sm:$0xff]  ;;  %v845_v50 = vld [vmem:[%s2396_s8 + $0x148] sm:$0xff] }
  0x3a   : > { %v550_v58 = vsel %vm540_vm14, %v535_v47, %v545_v54  ;;  %v1980_v60 = vsel %vm572_vm13, %v567_v36, %v568_v44  ;;  %616 = vrot.lane.b32.xlu1 %v586_v56, %s1724_s13  ;;  %vm1725_vm8 = vmmov 0   ;;  %v569_v2 = vrot.slane %v564_v49, 7  ;;  %854 = vmatprep.subr.mxu1 %v847_v10  ;;  %v842_v54 = vld [vmem:[%s2396_s8 + $0x130] sm:$0xff]  ;;  %v817_v10 = vld [vmem:[%s2396_s8 + $0x68] sm:$0xff] }
  0x3b   : > { %v565_v61 = vsel %vm1972_vm3, %v550_v58, 0.0  ;;  %vm502_vm4 = vcmp.ge.s32.totalorder %v497_v55, 0  ;;  %vm507_vm6 = vcmp.lt.s32.totalorder %v497_v55, 96  ;;  %v551_v0 = vsel %vm541_vm2, %v536_v51, %v546_v59  ;;  %1445 = vmatprep.mubr.msk.f32.mxu0 %vm1725_vm8, %v1722_v13  ;;  %855 = vmatpush1.msra.mxu1 %v846_v11  ;;  %v839_v58 = vld [vmem:[%s2396_s8 + $0x118] sm:$0xff]  ;;  %v830_v4 = vld [vmem:[%s2396_s8 + $0xd0] sm:$0xff]  ;;  %v816_v11 = vld [vmem:[%s2396_s8 + $0x60] sm:$0xff] }
  0x3c   : > { %v581_v62 = vrot.slane %v565_v61, 1  ;;  %vm1985_vm7 = vmand %vm502_vm4, %vm507_vm6  ;;  %v570_v3 = vrot.slane %v565_v61, 7  ;;  %v2011_v12 = vsel %vm572_vm13, %v568_v44, %v569_v2  ;;  %856 = vmatprep.subr.mxu1 %v844_v15  ;;  %vm629_vm10 = vcmask 130048   ;;  %v813_v15 = vld [vmem:[%s2396_s8 + $0x48] sm:$0xff] }
  0x3d   : > { %598 = vrot.lane.b32.xlu0 %v564_v49, %s1723_s18  ;;  %v566_v1 = vsel %vm1985_vm7, %v551_v0, 0.0  ;;  %857 = vmatpush1.msra.mxu1 %v843_v19  ;;  %vm635_vm11 = vcmask 261120   ;;  %vm654_vm14 = vcmask 392192   ;;  %v812_v19 = vld [vmem:[%s2396_s8 + $0x40] sm:$0xff] }
  0x3e   : > { %v585_v6 = vsel %vm583_vm0, %v580_v53, %v581_v62  ;;  %v582_v7 = vrot.slane %v566_v1, 1  ;;  %v571_v8 = vrot.slane %v566_v1, 7  ;;  %v2015_v14 = vsel %vm572_vm13, %v569_v2, %v570_v3  ;;  %858 = vmatprep.subr.mxu1 %v841_v20  ;;  %v808_v20 = vld [vmem:[%s2396_s8 + $0x20] sm:$0xff] }
  0x3f   : > { %618 = vrot.lane.b32.xlu1 %v585_v6, %s1724_s13  ;;  %859 = vmatpush1.msra.mxu1 %v840_v21  ;;  %v827_v6 = vld [vmem:[%s2396_s8 + $0xb8] sm:$0xff] }
  0x40   : > { %v584_v16 = vsel %vm583_vm0, %v581_v62, %v582_v7  ;;  %v577_v17 = vsel %vm572_vm13, %v571_v8, %v567_v36  ;;  %v2028_v18 = vsel %vm572_vm13, %v570_v3, %v571_v8  ;;  %v588_v23 = vsel %vm583_vm0, %v582_v7, %v578_v37  ;;  %860 = vmatprep.subr.mxu1 %v838_v22  ;;  %v820_v36 = vld [vmem:[%s2396_s8 + $0x80] sm:$0xff]  ;;  %v819_v37 = vld [vmem:[%s2396_s8 + $0x78] sm:$0xff]  ;;  %v821_v8 = vld [vmem:[%s2396_s8 + $0x88] sm:$0xff] }
  0x41   : > { %600 = vrot.lane.b32.xlu0 %v565_v61, %s1723_s18  ;;  %861 = vmatpush1.msra.mxu1 %v837_v24  ;;  %v836_v61 = vld [vmem:[%s2396_s8 + $0x100] sm:$0xff]  ;;  %v807_v21 = vld [vmem:[%s2396_s8 + $0x18] sm:$0xff]  ;;  %v809_v22 = vld [vmem:[%s2396_s8 + $0x28] sm:$0xff] }
  0x42   : > { %862 = vmatprep.subr.mxu1 %v835_v25  ;;  %v824_v7 = vld [vmem:[%s2396_s8 + $0xa0] sm:$0xff]  ;;  %v806_v25 = vld [vmem:[%s2396_s8 + $0x10] sm:$0xff] }
  0x43   : > { %620 = vrot.lane.b32.xlu1 %v584_v16, %s1724_s13  ;;  %863 = vmatpush1.msra.mxu1 %v834_v26  ;;  %v815_v16 = vld [vmem:[%s2396_s8 + $0x58] sm:$0xff]  ;;  %v804_v24 = vld [vmem:[%s2396_s8] sm:$0xff] }
  0x44   : > { %864 = vmatprep.subr.mxu1 %v832_v27  ;;  %v1356_v26 = vld [vmem:[%s2393_s5] ss:$0 sm:$0xff] }
  0x45   : > { %602 = vrot.lane.b32.xlu0 %v566_v1, %s1723_s18  ;;  %865 = vmatpush1.msra.mxu1 %v831_v28  ;;  %v833_v1 = vld [vmem:[%s2396_s8 + $0xe8] sm:$0xff]  ;;  %v1362_v28 = vld [vmem:[%s2394_s6] ss:$0 sm:$0xff] }
  0x46   : > { %866 = vmatprep.subr.mxu1 %v829_v30 }
  0x47   : > { %622 = vrot.lane.b32.xlu1 %v588_v23, %s1724_s13  ;;  %867 = vmatpush1.msra.mxu1 %v828_v31  ;;  %v805_v23 = vld [vmem:[%s2396_s8 + $0x8] sm:$0xff]  ;;  %v1363_v31 = vld [vmem:[%s2395_s7] ss:$0 sm:$0xff] }
  0x48   : > { %868 = vmatprep.subr.mxu1 %v826_v32 }
  0x49   : > { %869 = vmatpush1.msra.mxu1 %v825_v33 }
  0x4a   : > { %870 = vmatprep.subr.mxu1 %v823_v34 }
  0x4b   : > { %871 = vmatpush1.msra.mxu1 %v822_v35 }
  0x4c   : > { %872 = vmatprep.subr.mxu1 %v820_v36 }
  0x4d   : > { %873 = vmatpush1.msra.mxu1 %v819_v37 }
  0x4e   : > { %874 = vmatprep.subr.mxu1 %v817_v10 }
  0x4f   : > { %875 = vmatpush1.msra.mxu1 %v816_v11 }
  0xa6   : > { %v595_v39 = vpop.permute.xlu0 %594 }
  0xa7   : > { %v630_v41 = vsel %vm629_vm10, %v577_v17, %v595_v39  ;;  %v811_v17 = vld [vmem:[%s2396_s8 + $0x38] sm:$0xff] }
  0xa8   : > { %v597_v40 = vpop.permute.xlu1 %596 }
  0xa9   : > { %v631_v45 = vsel %vm629_vm10, %v1980_v60, %v597_v40 }
  0xab   : > { %v615_v42 = vpop.permute.xlu0 %614 }
  0xac   : > { %v636_v44 = vsel %vm635_vm11, %v630_v41, %v615_v42  ;;  %v617_v47 = vpop.permute.xlu1 %616 }
  0xad   : > { %1446 = vmatmul.mubr.msk.f32.vlgmr.msra.gmra.mxu0 %vm654_vm14, %v636_v44  ;;  %v637_v51 = vsel %vm635_vm11, %v631_v45, %v617_v47 }
  0xae   : > { %1448 = vmatprep.mubr.msk.f32.mxu0 %vm1725_vm8, %v1722_v13  ;;  %1461 = vmatpush3.msra.mxu0 %v851_v43 }
  0xaf   : > { %v599_v49 = vpop.permute.xlu0 %598  ;;  %1462 = vmatprep.subr.mxu0 %v1722_v13 }
  0xb0   : > { %v632_v52 = vsel %vm629_vm10, %v2011_v12, %v599_v49  ;;  %1463 = vmatpush3.msra.mxu0 %v848_v48  ;;  %v818_v12 = vld [vmem:[%s2396_s8 + $0x70] sm:$0xff] }
  0xb1   : > { %1449 = vmatmul.mubr.msk.f32.gmra.mxu0 %vm654_vm14, %v637_v51  ;;  %v619_v53 = vpop.permute.xlu1 %618  ;;  %1464 = vmatprep.subr.mxu0 %v1722_v13 }
  0xb2   : > { %v638_v55 = vsel %vm635_vm11, %v632_v52, %v619_v53  ;;  %1451 = vmatprep.mubr.msk.f32.mxu0 %vm1725_vm8, %v1722_v13  ;;  %1465 = vmatpush3.msra.mxu0 %v845_v50 }
  0xb3   : > { %v601_v56 = vpop.permute.xlu0 %600  ;;  %1466 = vmatprep.subr.mxu0 %v1722_v13 }
  0xb4   : > { %v633_v59 = vsel %vm629_vm10, %v2015_v14, %v601_v56  ;;  %1467 = vmatpush3.msra.mxu0 %v842_v54  ;;  %v814_v14 = vld [vmem:[%s2396_s8 + $0x50] sm:$0xff] }
  0xb5   : > { %1452 = vmatmul.mubr.msk.f32.gmra.mxu0 %vm654_vm14, %v638_v55  ;;  %v621_v60 = vpop.permute.xlu1 %620  ;;  %1468 = vmatprep.subr.mxu0 %v1722_v13 }
  0xb6   : > { %v639_v62 = vsel %vm635_vm11, %v633_v59, %v621_v60  ;;  %1454 = vmatprep.mubr.msk.f32.mxu0 %vm1725_vm8, %v1722_v13  ;;  %1469 = vmatpush3.msra.mxu0 %v839_v58 }
  0xb7   : > { %v603_v0 = vpop.permute.xlu0 %602  ;;  %1470 = vmatprep.subr.mxu0 %v1722_v13  ;;  %876 = vmatprep.subr.mxu1 %v814_v14 }
  0xb8   : > { %v634_v2 = vsel %vm629_vm10, %v2028_v18, %v603_v0  ;;  %1471 = vmatpush3.msra.mxu0 %v836_v61  ;;  %877 = vmatpush1.msra.mxu1 %v813_v15  ;;  %v810_v18 = vld [vmem:[%s2396_s8 + $0x30] sm:$0xff] }
  0xb9   : > { %1455 = vmatmul.mubr.msk.f32.gmra.mxu0 %vm654_vm14, %v639_v62  ;;  %v623_v3 = vpop.permute.xlu1 %622  ;;  %1472 = vmatprep.subr.mxu0 %v1722_v13 }
  0xba   : > { %v640_v5 = vsel %vm635_vm11, %v634_v2, %v623_v3  ;;  %1457 = vmatprep.mubr.msk.f32.mxu0 %vm1725_vm8, %v1722_v13  ;;  %1473 = vmatpush3.msra.mxu0 %v833_v1 }
  0xbb   : > { %1474 = vmatprep.subr.mxu0 %v1722_v13  ;;  %878 = vmatprep.subr.mxu1 %v811_v17 }
  0xbc   : > { %1475 = vmatpush3.msra.mxu0 %v830_v4  ;;  %879 = vmatpush1.msra.mxu1 %v810_v18 }
  0xbd   : > { %1458 = vmatmul.mubr.msk.f32.gmra.mxu0 %vm654_vm14, %v640_v5  ;;  %1476 = vmatprep.subr.mxu0 %v1722_v13 }
  0xbe   : > { %1477 = vmatpush3.msra.mxu0 %v827_v6  ;;  %1492 = vmatprep.mubr.msk.f32.mxu0 %vm1725_vm8, %v1722_v13 }
  0xbf   : > { %1478 = vmatprep.subr.mxu0 %v1722_v13  ;;  %880 = vmatprep.subr.mxu1 %v808_v20 }
  0xc0   : > { %1479 = vmatpush3.msra.mxu0 %v824_v7  ;;  %881 = vmatpush1.msra.mxu1 %v807_v21  ;;  %v1374_v21 = vld [vmem:[%s2397_s9] ss:$0 sm:$0xff] }
  0xc1   : > { %1480 = vmatprep.subr.mxu0 %v1722_v13  ;;  %882 = vmatprep.subr.mxu1 %v805_v23 }
  0xc2   : > { %1481 = vmatpush3.msra.mxu0 %v821_v8  ;;  %883 = vmatpush1.msra.mxu1 %v804_v24 }
  0xc3   : > { %1482 = vmatprep.subr.mxu0 %v1722_v13 }
  0xc4   : > { %1483 = vmatpush3.msra.mxu0 %v818_v12 }
  0xc5   : > { %1484 = vmatprep.subr.mxu0 %v1722_v13 }
  0xc6   : > { %1485 = vmatpush3.msra.mxu0 %v815_v16 }
  0xc7   : > { %1486 = vmatprep.subr.mxu0 %v1722_v13 }
  0xc8   : > { %1487 = vmatpush3.msra.mxu0 %v812_v19 }
  0xc9   : > { %1488 = vmatprep.subr.mxu0 %v1722_v13 }
  0xca   : > { %1489 = vmatpush3.msra.mxu0 %v809_v22 }
  0xcb   : > { %1490 = vmatprep.subr.mxu0 %v1722_v13 }
  0xcc   : > { %1491 = vmatpush3.msra.mxu0 %v806_v25 }
 0x16d   : > { %v736_v27 = vpop.f32.mrf.mxu0 }
 0x16e   : > { %v737_v30 = vadd.f32 %v1356_v26, %v736_v27 }
 0x16f   : > { %v1447_v32 = vpop.f32.mrf.mxu0 }
 0x170   : > { %v767_v33 = vmul.f32 %v1362_v28, %v737_v30 }
 0x171   : > { %v741_v34 = vpop.f32.mrf.mxu0 }
 0x172   : > { %v779_v35 = vadd.f32 %v1363_v31, %v767_v33  ;;  %v742_v36 = vadd.f32 %v1356_v26, %v741_v34 }
 0x173   : > { %v1450_v37 = vpop.f32.mrf.mxu0 }
 0x174   : > { %v768_v39 = vmul.f32 %v1362_v28, %v742_v36  ;;  %vm784_vm15 = vcmp.ge.f32.partialorder %v779_v35, 0.0  ;;  %v789_v40 = vmul.f32 0.3, %v779_v35 }
 0x175   : > { %v746_v41 = vpop.f32.mrf.mxu0 }
 0x176   : > { %v780_v42 = vadd.f32 %v1363_v31, %v768_v39  ;;  %v747_v43 = vadd.f32 %v1356_v26, %v746_v41  ;;  %v794_v44 = vsel %vm784_vm15, %v779_v35, %v789_v40 }
 0x177   : > { %v1453_v45 = vpop.f32.mrf.mxu0  ;;  %1364 = vmatmul.mubr.msk.f32.vlgmr.msra.gmra.mxu1 %vm1920_vm5, %v794_v44  ;;  %1493 = vmatmul.mubr.msk.f32.vlgmr.msra.gmra.mxu0 %vm1920_vm5, %v794_v44 }
 0x178   : > { %v769_v47 = vmul.f32 %v1362_v28, %v747_v43  ;;  %922 = vmatprep.mubr.f32.mxu1 %v1722_v13  ;;  %1495 = vmatprep.mubr.msk.f32.mxu0 %vm1725_vm8, %v1722_v13  ;;  %vm785_vm1 = vcmp.ge.f32.partialorder %v780_v42, 0.0  ;;  %v790_v48 = vmul.f32 0.3, %v780_v42 }
 0x179   : > { %v751_v49 = vpop.f32.mrf.mxu0 }
 0x17a   : > { %v781_v50 = vadd.f32 %v1363_v31, %v769_v47  ;;  %v752_v51 = vadd.f32 %v1356_v26, %v751_v49  ;;  %v795_v52 = vsel %vm785_vm1, %v780_v42, %v790_v48  ;;  %v1095_v48 = vstv %s1375_s28  ;;  %s2439_s28 = sld [smem:[#allocation19_spill]] (!%p1376_p2) }
 0x17b   : > { %v1456_v53 = vpop.f32.mrf.mxu0  ;;  %1365 = vmatmul.mubr.msk.f32.gmra.mxu1 %vm1937_vm9, %v795_v52  ;;  %1496 = vmatmul.mubr.msk.f32.gmra.mxu0 %vm1937_vm9, %v795_v52  ;;  %v1096_v49 = vadd.s32 %v1095_v48, %v1891_v9 }
 0x17c   : > { %v770_v29 = vmul.f32 %v1362_v28, %v752_v51  ;;  %928 = vmatprep.mubr.f32.mxu1 %v1722_v13  ;;  %1498 = vmatprep.mubr.msk.f32.mxu0 %vm1725_vm8, %v1722_v13  ;;  %vm786_vm5 = vcmp.ge.f32.partialorder %v781_v50, 0.0  ;;  %v791_v54 = vmul.f32 0.3, %v781_v50 }
 0x17d   : > { %v756_v55 = vpop.f32.mrf.mxu0 }
 0x17e   : > { %v782_v56 = vadd.f32 %v1363_v31, %v770_v29  ;;  %v757_v58 = vadd.f32 %v1356_v26, %v756_v55  ;;  %v796_v59 = vsel %vm786_vm5, %v781_v50, %v791_v54 }
 0x17f   : > { %v1459_v60 = vpop.f32.mrf.mxu0  ;;  %1366 = vmatmul.mubr.msk.f32.gmra.mxu1 %vm1951_vm12, %v796_v59  ;;  %1499 = vmatmul.mubr.msk.f32.gmra.mxu0 %vm1951_vm12, %v796_v59 }
 0x180   : > { %v771_v38 = vmul.f32 %v1362_v28, %v757_v58  ;;  %934 = vmatprep.mubr.f32.mxu1 %v1722_v13  ;;  %1501 = vmatprep.mubr.msk.f32.mxu0 %vm1725_vm8, %v1722_v13  ;;  %vm787_vm9 = vcmp.ge.f32.partialorder %v782_v56, 0.0  ;;  %v792_v61 = vmul.f32 0.3, %v782_v56 }
 0x182   : > { %v783_v62 = vadd.f32 %v1363_v31, %v771_v38  ;;  %v797_v0 = vsel %vm787_vm9, %v782_v56, %v792_v61  ;;  %v1097_v38 = vld [vmem:[#allocation4] sm:$0x1] }
 0x183   : > { %1367 = vmatmul.mubr.msk.f32.gmra.mxu1 %vm1972_vm3, %v797_v0  ;;  %1502 = vmatmul.mubr.msk.f32.gmra.mxu0 %vm1972_vm3, %v797_v0 }
 0x184   : > { %940 = vmatprep.mubr.f32.mxu1 %v1722_v13  ;;  %1504 = vmatprep.mubr.msk.f32.mxu0 %vm1725_vm8, %v1722_v13  ;;  %vm788_vm12 = vcmp.ge.f32.partialorder %v783_v62, 0.0  ;;  %v793_v46 = vmul.f32 0.3, %v783_v62 }
 0x186   : > { %v798_v1 = vsel %vm788_vm12, %v783_v62, %v793_v46 }
 0x187   : > { %1368 = vmatmul.mubr.msk.f32.gmra.mxu1 %vm1985_vm7, %v798_v1  ;;  %1505 = vmatmul.mubr.msk.f32.gmra.mxu0 %vm1985_vm7, %v798_v1 }
 0x237   : > { %v918_v2 = vpop.f32.mrf.mxu1  ;;  %v1013_v3 = vpop.f32.mrf.mxu0 }
 0x238   : > { %v1037_v7 = vrot.slane %v918_v2, 7 }
 0x239   : > { %v920_v4 = vpop.f32.mrf.mxu1  ;;  %v1494_v5 = vpop.f32.mrf.mxu0 }
 0x23b   : > { %v924_v57 = vpop.f32.mrf.mxu1  ;;  %v1018_v6 = vpop.f32.mrf.mxu0 }
 0x23c   : > { %v1038_v8 = vrot.slane %v924_v57, 7  ;;  %v1053_v15 = vrot.slane %v1018_v6, 1 }
 0x23d   : > { %v926_v10 = vpop.f32.mrf.mxu1  ;;  %v1497_v11 = vpop.f32.mrf.mxu0 }
 0x23e   : > { %v1045_v13 = vsel %vm572_vm13, %v1037_v7, %v1038_v8 }
 0x23f   : > { %v930_v12 = vpop.f32.mrf.mxu1  ;;  %v1023_v14 = vpop.f32.mrf.mxu0  ;;  %v1048_v63 = vadd.f32 %v1045_v13, %v926_v10 }
 0x240   : > { %v1039_v16 = vrot.slane %v930_v12, 7  ;;  %v1054_v17 = vrot.slane %v1023_v14, 1 }
 0x241   : > { %v932_v18 = vpop.f32.mrf.mxu1  ;;  %v1500_v19 = vpop.f32.mrf.mxu0 }
 0x242   : > { %v1059_v20 = vsel %vm583_vm0, %v1053_v15, %v1054_v17  ;;  %v1044_v22 = vsel %vm572_vm13, %v1038_v8, %v1039_v16 }
 0x243   : > { %v1063_v23 = vadd.f32 %v1059_v20, %v1048_v63  ;;  %v936_v24 = vpop.f32.mrf.mxu1  ;;  %v1028_v25 = vpop.f32.mrf.mxu0  ;;  %v1049_v30 = vadd.f32 %v1044_v22, %v932_v18 }
 0x244   : > { %v1040_v26 = vrot.slane %v936_v24, 7  ;;  %v1055_v27 = vrot.slane %v1028_v25, 1 }
 0x245   : > { %v1075_v28 = vadd.f32 %v1374_v21, %v1063_v23  ;;  %v938_v31 = vpop.f32.mrf.mxu1  ;;  %v1503_v32 = vpop.f32.mrf.mxu0 }
 0x246   : > { %v1058_v33 = vsel %vm583_vm0, %v1054_v17, %v1055_v27  ;;  %v1043_v34 = vsel %vm572_vm13, %v1039_v16, %v1040_v26  ;;  %vm1098_vm13 = vcmp.lt.s32.totalorder %v1096_v49, 32 }
 0x247   : > { %1080 = vst [vmem:[#allocation2 + $0x8] sm:$0xff] %v1075_v28  ;;  %v1064_v35 = vadd.f32 %v1058_v33, %v1049_v30  ;;  %v942_v36 = vpop.f32.mrf.mxu1  ;;  %v1033_v37 = vpop.f32.mrf.mxu0  ;;  %v1050_v41 = vadd.f32 %v1043_v34, %v938_v31 }
 0x248   : > { %v1056_v39 = vrot.slane %v1033_v37, 1 }
 0x249   : > { %v1076_v40 = vadd.f32 %v1374_v21, %v1064_v35  ;;  %v944_v42 = vpop.f32.mrf.mxu1  ;;  %v1506_v43 = vpop.f32.mrf.mxu0 }
 0x24a   : > { %v1057_v44 = vsel %vm583_vm0, %v1055_v27, %v1056_v39 }
 0x24b   : > { %1081 = vst [vmem:[#allocation2 + $0x10] sm:$0xff] %v1076_v40  ;;  %v1065_v45 = vadd.f32 %v1057_v44, %v1050_v41 }
 0x24d   : > { %v1077_v47 = vadd.f32 %v1374_v21, %v1065_v45 }
 0x24f   : > { %1082 = vst [vmem:[#allocation2 + $0x18] sm:$0xff] %v1077_v47 }
 0x256   : > { %v1087_v50 = vld [vmem:[#allocation2 + $0x9] ss:$3 sm:$0xff]  ;;  %v1089_v51 = vld [vmem:[#allocation2 + $0xa] ss:$3 sm:$0xff]  ;;  %v1085_v53 = vld [vmem:[#allocation2 + $0x8] ss:$3 sm:$0xff] }
 0x257   : > { %v1090_v52 = vmax.f32 %v1087_v50, %v1089_v51 }
 0x259   : > { %v1091_v29 = vmax.f32 %v1085_v53, %v1090_v52 }
 0x25b   : > { %1094 = vst [vmem:[%s1093_s14] sm:$0xff] %v1091_v29  ;;  %v1101_v54 = vsel %vm1098_vm13, %v1091_v29, 0.0 }
 0x25c   : > { %v1102_v55 = vrot.slane %v1101_v54, 4 }
 0x25e   : > { %v1103_v56 = vadd.f32 %v1102_v55, %v1101_v54 }
 0x260   : > { %v1104_v58 = vrot.slane %v1103_v56, 2 }
 0x262   : > { %v1105_v59 = vadd.f32 %v1104_v58, %v1103_v56 }
 0x264   : > { %v1106_v60 = vrot.slane %v1105_v59, 1 }
 0x266   : > { %v1107_v61 = vadd.f32 %v1106_v60, %v1105_v59  ;;  %1113 = sbr.rel (%p1376_p2) target bundleno = 887 (0x377), region = 76 }
 0x268   : > { %v1108_v62 = vadd.f32 %v1107_v61, %v1097_v38 }
 0x26a   : > { %1109 = vst [vmem:[#allocation4] sm:$0x1] %v1108_v62 }
 0x26b   : > { %v1131_v0 = vld [vmem:[%s2398_s10 + $0x78] sm:$0xff]  ;;  %v1726_v46 = vmov 0.0   ;;  %v1130_v1 = vld [vmem:[%s2398_s10 + $0x70] sm:$0xff]  ;;  %vm1727_vm0 = vmmov 0   ;;  %v1129_v2 = vld [vmem:[%s2398_s10 + $0x68] sm:$0xff]  ;;  %v1216_v24 = vsub.s32 0, %v1891_v9 }
 0x26c   : > { %1507 = vmatprep.subr.mxu0 %v1726_v46  ;;  %1539 = vmatprep.mubr.msk.f32.mxu0 %vm1727_vm0, %v1726_v46  ;;  %v1128_v3 = vld [vmem:[%s2398_s10 + $0x60] sm:$0xff]  ;;  %v1127_v4 = vld [vmem:[%s2398_s10 + $0x58] sm:$0xff]  ;;  %v1126_v5 = vld [vmem:[%s2398_s10 + $0x50] sm:$0xff] }
 0x26d   : > { %1508 = vmatpush3.msra.mxu0 %v1131_v0  ;;  %v1125_v57 = vld [vmem:[%s2398_s10 + $0x48] sm:$0xff]  ;;  %v1124_v6 = vld [vmem:[%s2398_s10 + $0x40] sm:$0xff]  ;;  %v1123_v7 = vld [vmem:[%s2398_s10 + $0x38] sm:$0xff] }
 0x26e   : > { %1509 = vmatprep.subr.mxu0 %v1726_v46  ;;  %v1122_v8 = vld [vmem:[%s2398_s10 + $0x30] sm:$0xff]  ;;  %v1121_v10 = vld [vmem:[%s2398_s10 + $0x28] sm:$0xff]  ;;  %v1120_v11 = vld [vmem:[%s2398_s10 + $0x20] sm:$0xff] }
 0x26f   : > { %1510 = vmatpush3.msra.mxu0 %v1130_v1  ;;  %v1119_v13 = vld [vmem:[%s2398_s10 + $0x18] sm:$0xff]  ;;  %v1118_v12 = vld [vmem:[%s2398_s10 + $0x10] sm:$0xff]  ;;  %v1117_v15 = vld [vmem:[%s2398_s10 + $0x8] sm:$0xff] }
 0x270   : > { %1511 = vmatprep.subr.mxu0 %v1726_v46  ;;  %v1116_v16 = vld [vmem:[%s2398_s10] sm:$0xff]  ;;  %v1210_v27 = vld [vmem:[#allocation3] sm:$0xff]  ;;  %v1211_v28 = vld [vmem:[#allocation3 + $0x8] sm:$0xff] }
 0x271   : > { %1512 = vmatpush3.msra.mxu0 %v1129_v2  ;;  %v1114_v14 = vld [vmem:[#allocation4] sm:$0x1]  ;;  %v1132_v63 = vld [vmem:[%s2439_s28] sm:$0x1]  ;;  %v1212_v30 = vld [vmem:[#allocation3 + $0x10] sm:$0xff] }
 0x272   : > { %1513 = vmatprep.subr.mxu0 %v1726_v46  ;;  %v1115_v17 = vmul.f32 0.03125, %v1114_v14  ;;  %v1213_v31 = vld [vmem:[#allocation3 + $0x18] sm:$0xff] }
 0x273   : > { %1514 = vmatpush3.msra.mxu0 %v1128_v3 }
 0x274   : > { %1515 = vmatprep.subr.mxu0 %v1726_v46 }
 0x275   : > { %1516 = vmatpush3.msra.mxu0 %v1127_v4 }
 0x276   : > { %1517 = vmatprep.subr.mxu0 %v1726_v46 }
 0x277   : > { %1518 = vmatpush3.msra.mxu0 %v1126_v5 }
 0x278   : > { %1519 = vmatprep.subr.mxu0 %v1726_v46 }
 0x279   : > { %1520 = vmatpush3.msra.mxu0 %v1125_v57 }
 0x27a   : > { %1521 = vmatprep.subr.mxu0 %v1726_v46 }
 0x27b   : > { %1522 = vmatpush3.msra.mxu0 %v1124_v6 }
 0x27c   : > { %1523 = vmatprep.subr.mxu0 %v1726_v46 }
 0x27d   : > { %1524 = vmatpush3.msra.mxu0 %v1123_v7 }
 0x27e   : > { %1525 = vmatprep.subr.mxu0 %v1726_v46 }
 0x27f   : > { %1526 = vmatpush3.msra.mxu0 %v1122_v8 }
 0x280   : > { %1527 = vmatprep.subr.mxu0 %v1726_v46 }
 0x281   : > { %1528 = vmatpush3.msra.mxu0 %v1121_v10 }
 0x282   : > { %1529 = vmatprep.subr.mxu0 %v1726_v46 }
 0x283   : > { %1530 = vmatpush3.msra.mxu0 %v1120_v11 }
 0x284   : > { %1531 = vmatprep.subr.mxu0 %v1726_v46 }
 0x285   : > { %1532 = vmatpush3.msra.mxu0 %v1119_v13 }
 0x286   : > { %1533 = vmatprep.subr.mxu0 %v1726_v46 }
 0x287   : > { %1534 = vmatpush3.msra.mxu0 %v1118_v12 }
 0x288   : > { %1535 = vmatprep.subr.mxu0 %v1726_v46 }
 0x289   : > { %1536 = vmatpush3.msra.mxu0 %v1117_v15 }
 0x28a   : > { %1537 = vmatprep.subr.mxu0 %v1726_v46 }
 0x28b   : > { %1538 = vmatpush3.msra.mxu0 %v1116_v16 }
 0x28c   : > { %1540 = vmatmul.mubr.f32.vlgmr.msra.gmra.mxu0 %v1115_v17 }
 0x34c   : > { %v1199_v18 = vpop.f32.mrf.mxu0 }
 0x34d   : > { %v1200_v19 = vadd.f32 %v1199_v18, %v1132_v63 }
 0x34e   : > { %v1541_v20 = vpop.f32.mrf.mxu0 }
 0x34f   : > { %v1377_v21 = vmul.f32 -1.442695, %v1200_v19 }
 0x351   : > { %1623 = vpow2.f32 %v1377_v21 }
 0x35e   : > { %v1624_v22 = vpop.eup %1623 }
 0x35f   : > { %v1206_v23 = vadd.f32 1.0, %v1624_v22 }
 0x361   : > { %1625 = vrcp.f32 %v1206_v23 }
 0x36e   : > { %v1626_v25 = vpop.eup %1625 }
 0x36f   : > { %v1209_v26 = vadd.f32 1.0, %v1626_v25 }
 0x371   : > { %v1217_v32 = vrot.slane %v1209_v26, %v1216_v24 }
 0x373   : > { %v1218_v33 = vmul.f32 %v1217_v32, %v1210_v27  ;;  %v1219_v34 = vmul.f32 %v1217_v32, %v1211_v28  ;;  %v1220_v35 = vmul.f32 %v1217_v32, %v1212_v30  ;;  %v1221_v36 = vmul.f32 %v1217_v32, %v1213_v31 }
 0x375   : > { %1222 = vst [vmem:[%s1879_s11] sm:$0xff] %v1218_v33  ;;  %1223 = vst [vmem:[%s1879_s11 + $0x8] sm:$0xff] %v1219_v34 }
 0x376   : > { %1224 = vst [vmem:[%s1879_s11 + $0x10] sm:$0xff] %v1220_v35  ;;  %1225 = vst [vmem:[%s1879_s11 + $0x18] sm:$0xff] %v1221_v36 }
 0x377 PF: > { %s2440_s14 = sld [smem:[#allocation9_spill]]  ;;  %s1383_s16 = sshll.u32 %s1707_s25, 9 }
 0x378   : > { %s2442_s29 = sld [smem:[#allocation20_spill]]  ;;  %s1240_s24 = sshll.u32 %s1879_s11, 4  ;;  %s2333_s24 = int_to_ptr.vmem [resolvable:$true] %s1240_s24 }
 0x379   : > { %s1627_s26 = scalar_lea.vmem %s2333_s24, 512  ;;  %s1728_s25 = smov [#allocation5]  }
 0x37a   : > { %p1628_p4 = scmp.ne.s32.totalorder %s2333_s24, %s1627_s26  ;;  %s1631_s27 = sshll.u32 %s1728_s25, 4  ;;  %s1632_s27 = int_to_ptr.vmem [resolvable:$false] %s1631_s27 }
 0x37b   : > { %s1633_s21 = scalar_lea.vmem %s1632_s27, 1024  ;;  %p1634_p7 = scmp.lt.s32.totalorder %s2333_s24, %s1632_s27 }
 0x37c   : > { %p1629_p5 = pnand %p1628_p4, %p1845_p3  ;;  %p1635_p8 = scmp.lt.s32.totalorder %s1633_s21, %s1627_s26 }
 0x37d   : > { %s2443_s18 = sand.u32 1, %s2440_s14  }
 0x37e   : > { %s2330_s30 = scalar_lea.hbm %s2442_s29, %s1383_s16  ;;  %s2337_s17 = scalar_lea.sflag [#allocation6], %s2443_s18 }
 0x37f   : > { %p1630_p6 = pneg %p1629_p5  ;;  %p1636_p10 = por %p1635_p8, %p1634_p7 }
 0x381   : > { %p1637_p11 = pnand %p1636_p10, %p1630_p6 }
 0x383   : > { %1640 = shalt.err (!%p1637_p11)
}
 0x384   : > { %s1641_s11 = scalar_lea.hbm %s2330_s30, 512  ;;  %s1645_s12 = scalar_lea.hbm %s2442_s29, 1024 }
 0x385   : > { %p1642_p12 = scmp.ne.s32.totalorder %s2330_s30, %s1641_s11  ;;  %p1646_p1 = scmp.lt.s32.totalorder %s2330_s30, %s2442_s29 }
 0x386   : > { %p1647_p2 = scmp.lt.s32.totalorder %s1645_s12, %s1641_s11 }
 0x387   : > { %p1643_p13 = pnand %p1642_p12, %p1845_p3 }
 0x388   : > { %p1648_p4 = por %p1647_p2, %p1646_p1 }
 0x389   : > { %p1644_p0 = pneg %p1643_p13 }
 0x38b   : > { %p1649_p5 = pnand %p1648_p4, %p1644_p0 }
 0x38d   : > { %1652 = shalt.err (!%p1649_p5)
}
 0x38e   : > { %s1729_s14 = smov 128   ;;  %s1730_s16 = smov 8  }
 0x38f   : > { %1543 = dma.vmem_to_hbm [thread:$0]  (%p1845_p3), %s2333_s24, 512, %s2330_s30, %s2337_s17, %s1729_s14, %s1729_s14, %s1730_s16  }
 0x390 PF: > { %s2444_s19 = sld [smem:[#allocation13_spill]] }
 0x391   : > { %s2445_s20 = sld [smem:[#allocation8_spill]] }
 0x396   : > { %p1549_p6 = scmp.ge.s32.totalorder %s2444_s19, 2 }
 0x397   : > { %s1255_s26 = sand.u32 1, %s2445_s20  }
 0x398   : > { %p1546_p7 = pnand %p1549_p6, %p1855_p9  ;;  %s1256_s25 = scalar_lea.sflag [#allocation6], %s1255_s26 }
 0x39a   : > { %p1547_p8 = pneg %p1546_p7 }
 0x39c   : > { %1686 = dma.done.wait (%p1547_p8), %s1256_s25, 512  }
 0x39d   : > { %1688 = vsyncadd (%p1547_p8), %s1256_s25, 4294966784  ;;  %s25_s28 = sadd.s32 1, %s2444_s19   ;;  %s2447_s21 = sld [smem:[#allocation9_spill]] }
 0x39e   : > { %p22_p10 = scmp.ge.s32.totalorder %s25_s28, 10   ;;  %s2448_s22 = sld [smem:[#allocation10_spill]] }
 0x39f   : > { %s2449_s23 = sld [smem:[#allocation18_spill]] }
 0x3a0   : > { %s2450_s24 = sld [smem:[#allocation11_spill]]  ;;  %24 = sbr.rel (!%p22_p10) target bundleno = 8 (0x8), region = 118 }
 0x3a1   : > { %s2451_s25 = sld [smem:[#allocation12_spill]] }
 0x3a2   : > { %s2452_s26 = sld [smem:[#allocation14_spill]] }
 0x3a3   : > { %s2453_s27 = sld [smem:[#allocation16_spill]] }
 0x3a5   :  { %1261 = vsyncpa [#allocation6], 1 }
 0x3a6   :  { %1263 = vsyncpa [#allocation6 + $0x1], 1 }

</bundles_post_ra>
